<compile_context>
chip_gen: v5e
topology: v5e:2x2
jax: 0.10.0
libtpu: 0.0.40
codegen_flags: <defaults>
</compile_context>

<pallas_src>
import functools

import jax
import jax.numpy as jnp
from jax.experimental import pallas as pl
from jax.experimental.pallas import tpu as pltpu


# ----------------------------------------------------------------------------
# Kernel 1: ConvTranspose2d(kernel=2, stride=2) == one matmul per sample.
#   up[n, co, 2i+di, 2j+dj] = sum_c x[n, c, i, j] * wt[c, co, di, dj] + bt[co]
# The output is written in a blocked layout (n, h, dj, co, j) so that a single
# cheap transpose in the wrapper yields the channel-major flat-spatial layout
# the double-conv kernel consumes (no 6-D interleave transpose, no pad concat).
# ----------------------------------------------------------------------------
def upconv_kernel(x_ref, wt_ref, bt_ref, o_ref, *, H, W, Cin, Hu):
    # x_ref : (1, Cin, H*W)         one sample, NCHW flattened (free reshape)
    # wt_ref: (4*Cin, Cin)          rows ordered (di, dj, co)
    # bt_ref: (4*Cin, 1)
    # o_ref : (1, Hu+4, 2, Cin, W)  o[0, 2i+di, dj, co, j] = up[co, 2i+di, 2j+dj]
    v = jnp.dot(wt_ref[...], x_ref[0],
                preferred_element_type=jnp.float32) + bt_ref[...]   # (4*Cin, H*W)
    for i in range(H):
        for di in range(2):
            for dj in range(2):
                r0 = (di * 2 + dj) * Cin
                o_ref[0, 2 * i + di, dj] = v[r0:r0 + Cin, i * W:(i + 1) * W]
    # 4 zero rows of spatial padding past the image so the shifted im2col slices
    # in the double-conv kernel stay in bounds (taps reach at most 2*Wu + 2 flat
    # positions past the last valid conv1 row; 4*Wu >= 2*Wu + 2 for Wu >= 1).
    zero = jnp.zeros((Cin, W), jnp.float32)
    for r in range(4):
        for dj in range(2):
            o_ref[0, Hu + r, dj] = zero


# ----------------------------------------------------------------------------
# Kernel 2: two 3x3 VALID convs, each as a single im2col contraction, with
# BatchNorm folded into the weights/bias and ReLU fused.  Channel-major layout:
# spatial is flattened row-major on the lane axis (stride Wu), Cout on sublanes.
# The flat trick produces row-wrap garbage columns (w in {Wu-2, Wu-1}) and
# garbage bottom rows; valid conv2 outputs only read y1 at h <= Hu-3, w <= Wu-3,
# so no garbage feeds a kept output; the wrapper crops columns >= Wu-4.
# ----------------------------------------------------------------------------
def doubleconv_kernel(u_ref, w1_ref, b1_ref, w2_ref, b2_ref, o_ref,
                      p1_ref, y1_ref, p2_ref, *, Wu, L1, L2, Cin, Cout):
    # u_ref : (1, Cin, M0)   up, channel-major flat spatial (h*Wu + w), M0 = (Hu+4)*Wu
    # w1_ref: (Cout, 9*Cin)  BN1-folded, cols ordered ((kh*3+kw), ci)
    # b1_ref: (Cout, 1)      BN1-folded bias
    # w2_ref: (Cout, 9*Cout) BN2-folded
    # b2_ref: (Cout, 1)
    # o_ref : (1, Cout, L2)  lane-dense output store
    # scratch: p1 (9*Cin, L1), y1 (Cout, L1), p2 (9*Cout, L2)

    # conv1: im2col patch then one (Cout, 9*Cin) x (9*Cin, L1) MXU contraction
    for kh in range(3):
        for kw in range(3):
            k = kh * 3 + kw
            off = kh * Wu + kw
            p1_ref[k * Cin:(k + 1) * Cin, :] = u_ref[0, :, off:off + L1]
    y1_ref[...] = jnp.maximum(
        jnp.dot(w1_ref[...], p1_ref[...], preferred_element_type=jnp.float32)
        + b1_ref[...], 0.0)

    # conv2: same structure on y1
    for kh in range(3):
        for kw in range(3):
            k = kh * 3 + kw
            off = kh * Wu + kw
            p2_ref[k * Cout:(k + 1) * Cout, :] = y1_ref[:, off:off + L2]
    o_ref[0] = jnp.maximum(
        jnp.dot(w2_ref[...], p2_ref[...], preferred_element_type=jnp.float32)
        + b2_ref[...], 0.0).astype(o_ref.dtype)


# ----------------------------------------------------------------------------
# Wrapper
# ----------------------------------------------------------------------------
def upandadd_forward(x_nchw, p):
    N, Cin, H, W = x_nchw.shape
    Cout = p['w1'].shape[0]
    eps = 1e-5
    assert H >= 3 and W >= 3, "need H, W >= 3 so both VALID 3x3 convs have output"

    Hu, Wu = 2 * H, 2 * W
    Hp = Hu + 4                   # 4 zero pad rows past the upsampled image
    M0 = Hp * Wu
    L1 = Hu * Wu                  # conv1 positions computed (incl. discarded garbage)
    L2 = (Hu - 4) * Wu            # conv2 positions computed

    x = x_nchw.astype(jnp.float32).reshape(N, Cin, H * W)   # free reshape of NCHW

    # ---- stage 1: ConvTranspose2d(k=2, s=2) ----
    # torch weight (Cin, Cout=Cin, 2, 2) -> rows (di, dj, co), cols c
    wt4 = jnp.transpose(p['wt'], (2, 3, 1, 0)).reshape(4 * Cin, Cin)
    bt4 = jnp.tile(p['bt'], 4).reshape(4 * Cin, 1)

    upk = functools.partial(upconv_kernel, H=H, W=W, Cin=Cin, Hu=Hu)
    upp = pl.pallas_call(
        upk,
        out_shape=jax.ShapeDtypeStruct((N, Hp, 2, Cin, W), jnp.float32),
        grid_spec=pltpu.PrefetchScalarGridSpec(
            num_scalar_prefetch=0,
            grid=(N,),
            in_specs=[
                pl.BlockSpec((1, Cin, H * W), lambda n: (n, 0, 0)),
                pl.BlockSpec((4 * Cin, Cin), lambda n: (0, 0)),
                pl.BlockSpec((4 * Cin, 1), lambda n: (0, 0)),
            ],
            out_specs=pl.BlockSpec((1, Hp, 2, Cin, W), lambda n: (n, 0, 0, 0, 0)),
        ),
        compiler_params=pltpu.CompilerParams(dimension_semantics=("parallel",)),
    )(x, wt4, bt4)

    # upp[n, h, dj, co, j] == up[n, co, h, 2j+dj]; one small pass over `up` gives the
    # channel-major flat-spatial layout the double-conv kernel wants.
    up_cm = jnp.transpose(upp, (0, 3, 1, 4, 2)).reshape(N, Cin, M0)

    # ---- stage 2 params: BN folded into conv weights/bias ----
    s1 = p['gamma1'] / jnp.sqrt(p['var1'] + eps)
    s2 = p['gamma2'] / jnp.sqrt(p['var2'] + eps)
    # (Cout, Cin, 3, 3) -> (Cout, (kh,kw,ci)) scaled per output channel
    w1f = jnp.transpose(p['w1'], (0, 2, 3, 1)).reshape(Cout, 9 * Cin) * s1[:, None]
    b1f = ((p['b1'] - p['mean1']) * s1 + p['beta1']).reshape(Cout, 1)
    w2f = jnp.transpose(p['w2'], (0, 2, 3, 1)).reshape(Cout, 9 * Cout) * s2[:, None]
    b2f = ((p['b2'] - p['mean2']) * s2 + p['beta2']).reshape(Cout, 1)

    dck = functools.partial(doubleconv_kernel, Wu=Wu, L1=L1, L2=L2, Cin=Cin, Cout=Cout)
    out_cm = pl.pallas_call(
        dck,
        out_shape=jax.ShapeDtypeStruct((N, Cout, L2), jnp.float32),
        grid_spec=pltpu.PrefetchScalarGridSpec(
            num_scalar_prefetch=0,
            grid=(N,),
            in_specs=[
                pl.BlockSpec((1, Cin, M0), lambda n: (n, 0, 0)),
                pl.BlockSpec((Cout, 9 * Cin), lambda n: (0, 0)),
                pl.BlockSpec((Cout, 1), lambda n: (0, 0)),
                pl.BlockSpec((Cout, 9 * Cout), lambda n: (0, 0)),
                pl.BlockSpec((Cout, 1), lambda n: (0, 0)),
            ],
            out_specs=pl.BlockSpec((1, Cout, L2), lambda n: (n, 0, 0)),
            scratch_shapes=[
                pltpu.VMEM((9 * Cin, L1), jnp.float32),
                pltpu.VMEM((Cout, L1), jnp.float32),
                pltpu.VMEM((9 * Cout, L2), jnp.float32),
            ],
        ),
        compiler_params=pltpu.CompilerParams(dimension_semantics=("parallel",)),
    )(up_cm, w1f, b1f, w2f, b2f)

    # Drop the wrap-around garbage columns; result is already channel-major -> NCHW
    # for free (no output transpose).
    out = out_cm.reshape(N, Cout, Hu - 4, Wu)[:, :, :, :Wu - 4]
    return out


# ----------------------------------------------------------------------------
# Pure-JAX reference (independent math path, HIGHEST precision) for validation
# ----------------------------------------------------------------------------
def ref_forward(x, p):
    N, Cin, H, W = x.shape
    eps = 1e-5
    hp = jax.lax.Precision.HIGHEST
    t = jnp.einsum('nchw,cokl->nohkwl', x, p['wt'], precision=hp)
    up = t.reshape(N, Cin, 2 * H, 2 * W) + p['bt'][None, :, None, None]

    def conv_bn_relu(z, w, b, gamma, beta, mean, var):
        y = jax.lax.conv_general_dilated(
            z, w, (1, 1), 'VALID',
            dimension_numbers=('NCHW', 'OIHW', 'NCHW'), precision=hp)
        y = y + b[None, :, None, None]
        scale = gamma / jnp.sqrt(var + eps)
        y = (y - mean[None, :, None, None]) * scale[None, :, None, None] \
            + beta[None, :, None, None]
        return jnp.maximum(y, 0.0)

    y = conv_bn_relu(up, p['w1'], p['b1'], p['gamma1'], p['beta1'], p['mean1'], p['var1'])
    y = conv_bn_relu(y, p['w2'], p['b2'], p['gamma2'], p['beta2'], p['mean2'], p['var2'])
    return y


def init_params(key, cin, cout):
    ks = jax.random.split(key, 14)
    p = {
        'wt': jax.random.normal(ks[0], (cin, cin, 2, 2), jnp.float32) * 0.25,
        'bt': jax.random.normal(ks[1], (cin,), jnp.float32) * 0.05,
        'w1': jax.random.normal(ks[2], (cout, cin, 3, 3), jnp.float32) * 0.2,
        'b1': jax.random.normal(ks[3], (cout,), jnp.float32) * 0.05,
        'w2': jax.random.normal(ks[4], (cout, cout, 3, 3), jnp.float32) * 0.2,
        'b2': jax.random.normal(ks[5], (cout,), jnp.float32) * 0.05,
        'gamma1': 1.0 + 0.1 * jax.random.normal(ks[6], (cout,), jnp.float32),
        'beta1': 0.1 * jax.random.normal(ks[7], (cout,), jnp.float32),
        'mean1': 0.1 * jax.random.normal(ks[10], (cout,), jnp.float32),
        'var1': jax.random.uniform(ks[11], (cout,), jnp.float32, 0.5, 1.5),
        'gamma2': 1.0 + 0.1 * jax.random.normal(ks[8], (cout,), jnp.float32),
        'beta2': 0.1 * jax.random.normal(ks[9], (cout,), jnp.float32),
        'mean2': 0.1 * jax.random.normal(ks[12], (cout,), jnp.float32),
        'var2': jax.random.uniform(ks[13], (cout,), jnp.float32, 0.5, 1.5),
    }
    return p


if __name__ == "__main__":
    key = jax.random.PRNGKey(0)
    kx, kp = jax.random.split(key)
    N, Cin, Cout, H, W = 2, 4, 8, 16, 16

    x = jax.random.normal(kx, (N, Cin, H, W), jnp.float32)
    params = init_params(kp, Cin, Cout)

    out = jax.block_until_ready(upandadd_forward(x, params))
    assert out.shape == (N, Cout, 2 * H - 4, 2 * W - 4), out.shape

    ref = jax.block_until_ready(ref_forward(x, params))
    err = float(jnp.max(jnp.abs(out - ref)))
    scale = float(jnp.max(jnp.abs(ref)))
    if err > 1e-3 * max(1.0, scale):
        raise SystemExit(f"max abs err too large: {err} (ref scale {scale})")
    print("KERNEL_OK")
</pallas_src>

<mosaic_0001>
module attributes {stable_mosaic.version = 11 : i64} {
  func.func @upconv_kernel(%arg0: i32, %arg1: memref<1x4x256xf32, #tpu.memory_space<vmem>>, %arg2: memref<16x4xf32, #tpu.memory_space<vmem>>, %arg3: memref<16x1xf32, #tpu.memory_space<vmem>>, %arg4: memref<1x36x2x4x16xf32, #tpu.memory_space<vmem>>) attributes {dimension_semantics = [#tpu.dimension_semantics<parallel>], iteration_bounds = array<i64: 2>, scalar_prefetch = 0 : i64, scratch_operands = 0 : i64, tpu.core_type = #tpu.core_type<tc>, window_params = [{transform_indices = @transform_0, window_bounds = array<i64: 1, 4, 256>}, {pipeline_mode = #tpu.pipeline_mode<synchronous>, transform_indices = @transform_1, window_bounds = array<i64: 16, 4>}, {pipeline_mode = #tpu.pipeline_mode<synchronous>, transform_indices = @transform_2, window_bounds = array<i64: 16, 1>}, {transform_indices = @transform_3, window_bounds = array<i64: 1, 36, 2, 4, 16>}]} {
    %c0 = arith.constant 0 : index
    %c0_0 = arith.constant 0 : index
    %0 = vector.load %arg2[%c0, %c0_0] : memref<16x4xf32, #tpu.memory_space<vmem>>, vector<16x4xf32>
    %c0_1 = arith.constant 0 : index
    %c0_2 = arith.constant 0 : index
    %c0_3 = arith.constant 0 : index
    %1 = vector.load %arg1[%c0_1, %c0_2, %c0_3] : memref<1x4x256xf32, #tpu.memory_space<vmem>>, vector<1x4x256xf32>
    %2 = vector.shape_cast %1 : vector<1x4x256xf32> to vector<4x256xf32>
    %cst = arith.constant dense<0.000000e+00> : vector<16x256xf32>
    %3 = tpu.matmul %0, %2, %cst {dimension_numbers = #tpu.dot_dimension_numbers<[1], [0], [0], [1], [0, 0, 1, 1], [], []>} : vector<16x4xf32>, vector<4x256xf32>, vector<16x256xf32> -> vector<16x256xf32>
    %c0_4 = arith.constant 0 : index
    %c0_5 = arith.constant 0 : index
    %4 = vector.load %arg3[%c0_4, %c0_5] : memref<16x1xf32, #tpu.memory_space<vmem>>, vector<16x1xf32>
    %5 = vector.broadcast %4 : vector<16x1xf32> to vector<16x256xf32>
    %6 = arith.addf %3, %5 : vector<16x256xf32>
    %7 = vector.extract_strided_slice %6 {offsets = [0, 0], sizes = [4, 16], strides = [1, 1]} : vector<16x256xf32> to vector<4x16xf32>
    %c0_6 = arith.constant 0 : index
    %c0_7 = arith.constant 0 : index
    %c0_8 = arith.constant 0 : index
    %c0_9 = arith.constant 0 : index
    %c0_10 = arith.constant 0 : index
    %8 = vector.load %arg4[%c0_6, %c0_7, %c0_8, %c0_9, %c0_10] : memref<1x36x2x4x16xf32, #tpu.memory_space<vmem>>, vector<1x1x1x4x16xf32>
    %9 = vector.shape_cast %8 : vector<1x1x1x4x16xf32> to vector<4x16xf32>
    %10 = vector.shape_cast %7 : vector<4x16xf32> to vector<1x1x1x4x16xf32>
    tpu.vector_store %arg4[%c0_6, %c0_7, %c0_8, %c0_9, %c0_10], %10 {strides = array<i32>} : memref<1x36x2x4x16xf32, #tpu.memory_space<vmem>>, vector<1x1x1x4x16xf32>,
    %11 = vector.extract_strided_slice %6 {offsets = [4, 0], sizes = [4, 16], strides = [1, 1]} : vector<16x256xf32> to vector<4x16xf32>
    %c0_11 = arith.constant 0 : index
    %c0_12 = arith.constant 0 : index
    %c1 = arith.constant 1 : index
    %c0_13 = arith.constant 0 : index
    %c0_14 = arith.constant 0 : index
    %12 = vector.load %arg4[%c0_11, %c0_12, %c1, %c0_13, %c0_14] : memref<1x36x2x4x16xf32, #tpu.memory_space<vmem>>, vector<1x1x1x4x16xf32>
    %13 = vector.shape_cast %12 : vector<1x1x1x4x16xf32> to vector<4x16xf32>
    %14 = vector.shape_cast %11 : vector<4x16xf32> to vector<1x1x1x4x16xf32>
    tpu.vector_store %arg4[%c0_11, %c0_12, %c1, %c0_13, %c0_14], %14 {strides = array<i32>} : memref<1x36x2x4x16xf32, #tpu.memory_space<vmem>>, vector<1x1x1x4x16xf32>,
    %15 = vector.extract_strided_slice %6 {offsets = [8, 0], sizes = [4, 16], strides = [1, 1]} : vector<16x256xf32> to vector<4x16xf32>
    %c0_15 = arith.constant 0 : index
    %c1_16 = arith.constant 1 : index
    %c0_17 = arith.constant 0 : index
    %c0_18 = arith.constant 0 : index
    %c0_19 = arith.constant 0 : index
    %16 = vector.load %arg4[%c0_15, %c1_16, %c0_17, %c0_18, %c0_19] : memref<1x36x2x4x16xf32, #tpu.memory_space<vmem>>, vector<1x1x1x4x16xf32>
    %17 = vector.shape_cast %16 : vector<1x1x1x4x16xf32> to vector<4x16xf32>
    %18 = vector.shape_cast %15 : vector<4x16xf32> to vector<1x1x1x4x16xf32>
    tpu.vector_store %arg4[%c0_15, %c1_16, %c0_17, %c0_18, %c0_19], %18 {strides = array<i32>} : memref<1x36x2x4x16xf32, #tpu.memory_space<vmem>>, vector<1x1x1x4x16xf32>,
    %19 = vector.extract_strided_slice %6 {offsets = [12, 0], sizes = [4, 16], strides = [1, 1]} : vector<16x256xf32> to vector<4x16xf32>
    %c0_20 = arith.constant 0 : index
    %c1_21 = arith.constant 1 : index
    %c1_22 = arith.constant 1 : index
    %c0_23 = arith.constant 0 : index
    %c0_24 = arith.constant 0 : index
    %20 = vector.load %arg4[%c0_20, %c1_21, %c1_22, %c0_23, %c0_24] : memref<1x36x2x4x16xf32, #tpu.memory_space<vmem>>, vector<1x1x1x4x16xf32>
    %21 = vector.shape_cast %20 : vector<1x1x1x4x16xf32> to vector<4x16xf32>
    %22 = vector.shape_cast %19 : vector<4x16xf32> to vector<1x1x1x4x16xf32>
    tpu.vector_store %arg4[%c0_20, %c1_21, %c1_22, %c0_23, %c0_24], %22 {strides = array<i32>} : memref<1x36x2x4x16xf32, #tpu.memory_space<vmem>>, vector<1x1x1x4x16xf32>,
    %23 = vector.extract_strided_slice %6 {offsets = [0, 16], sizes = [4, 16], strides = [1, 1]} : vector<16x256xf32> to vector<4x16xf32>
    %c0_25 = arith.constant 0 : index
    %c2 = arith.constant 2 : index
    %c0_26 = arith.constant 0 : index
    %c0_27 = arith.constant 0 : index
    %c0_28 = arith.constant 0 : index
    %24 = vector.load %arg4[%c0_25, %c2, %c0_26, %c0_27, %c0_28] : memref<1x36x2x4x16xf32, #tpu.memory_space<vmem>>, vector<1x1x1x4x16xf32>
    %25 = vector.shape_cast %24 : vector<1x1x1x4x16xf32> to vector<4x16xf32>
    %26 = vector.shape_cast %23 : vector<4x16xf32> to vector<1x1x1x4x16xf32>
    tpu.vector_store %arg4[%c0_25, %c2, %c0_26, %c0_27, %c0_28], %26 {strides = array<i32>} : memref<1x36x2x4x16xf32, #tpu.memory_space<vmem>>, vector<1x1x1x4x16xf32>,
    %27 = vector.extract_strided_slice %6 {offsets = [4, 16], sizes = [4, 16], strides = [1, 1]} : vector<16x256xf32> to vector<4x16xf32>
    %c0_29 = arith.constant 0 : index
    %c2_30 = arith.constant 2 : index
    %c1_31 = arith.constant 1 : index
    %c0_32 = arith.constant 0 : index
    %c0_33 = arith.constant 0 : index
    %28 = vector.load %arg4[%c0_29, %c2_30, %c1_31, %c0_32, %c0_33] : memref<1x36x2x4x16xf32, #tpu.memory_space<vmem>>, vector<1x1x1x4x16xf32>
    %29 = vector.shape_cast %28 : vector<1x1x1x4x16xf32> to vector<4x16xf32>
    %30 = vector.shape_cast %27 : vector<4x16xf32> to vector<1x1x1x4x16xf32>
    tpu.vector_store %arg4[%c0_29, %c2_30, %c1_31, %c0_32, %c0_33], %30 {strides = array<i32>} : memref<1x36x2x4x16xf32, #tpu.memory_space<vmem>>, vector<1x1x1x4x16xf32>,
    %31 = vector.extract_strided_slice %6 {offsets = [8, 16], sizes = [4, 16], strides = [1, 1]} : vector<16x256xf32> to vector<4x16xf32>
    %c0_34 = arith.constant 0 : index
    %c3 = arith.constant 3 : index
    %c0_35 = arith.constant 0 : index
    %c0_36 = arith.constant 0 : index
    %c0_37 = arith.constant 0 : index
    %32 = vector.load %arg4[%c0_34, %c3, %c0_35, %c0_36, %c0_37] : memref<1x36x2x4x16xf32, #tpu.memory_space<vmem>>, vector<1x1x1x4x16xf32>
    %33 = vector.shape_cast %32 : vector<1x1x1x4x16xf32> to vector<4x16xf32>
    %34 = vector.shape_cast %31 : vector<4x16xf32> to vector<1x1x1x4x16xf32>
    tpu.vector_store %arg4[%c0_34, %c3, %c0_35, %c0_36, %c0_37], %34 {strides = array<i32>} : memref<1x36x2x4x16xf32, #tpu.memory_space<vmem>>, vector<1x1x1x4x16xf32>,
    %35 = vector.extract_strided_slice %6 {offsets = [12, 16], sizes = [4, 16], strides = [1, 1]} : vector<16x256xf32> to vector<4x16xf32>
    %c0_38 = arith.constant 0 : index
    %c3_39 = arith.constant 3 : index
    %c1_40 = arith.constant 1 : index
    %c0_41 = arith.constant 0 : index
    %c0_42 = arith.constant 0 : index
    %36 = vector.load %arg4[%c0_38, %c3_39, %c1_40, %c0_41, %c0_42] : memref<1x36x2x4x16xf32, #tpu.memory_space<vmem>>, vector<1x1x1x4x16xf32>
    %37 = vector.shape_cast %36 : vector<1x1x1x4x16xf32> to vector<4x16xf32>
    %38 = vector.shape_cast %35 : vector<4x16xf32> to vector<1x1x1x4x16xf32>
    tpu.vector_store %arg4[%c0_38, %c3_39, %c1_40, %c0_41, %c0_42], %38 {strides = array<i32>} : memref<1x36x2x4x16xf32, #tpu.memory_space<vmem>>, vector<1x1x1x4x16xf32>,
    %39 = vector.extract_strided_slice %6 {offsets = [0, 32], sizes = [4, 16], strides = [1, 1]} : vector<16x256xf32> to vector<4x16xf32>
    %c0_43 = arith.constant 0 : index
    %c4 = arith.constant 4 : index
    %c0_44 = arith.constant 0 : index
    %c0_45 = arith.constant 0 : index
    %c0_46 = arith.constant 0 : index
    %40 = vector.load %arg4[%c0_43, %c4, %c0_44, %c0_45, %c0_46] : memref<1x36x2x4x16xf32, #tpu.memory_space<vmem>>, vector<1x1x1x4x16xf32>
    %41 = vector.shape_cast %40 : vector<1x1x1x4x16xf32> to vector<4x16xf32>
    %42 = vector.shape_cast %39 : vector<4x16xf32> to vector<1x1x1x4x16xf32>
    tpu.vector_store %arg4[%c0_43, %c4, %c0_44, %c0_45, %c0_46], %42 {strides = array<i32>} : memref<1x36x2x4x16xf32, #tpu.memory_space<vmem>>, vector<1x1x1x4x16xf32>,
    %43 = vector.extract_strided_slice %6 {offsets = [4, 32], sizes = [4, 16], strides = [1, 1]} : vector<16x256xf32> to vector<4x16xf32>
    %c0_47 = arith.constant 0 : index
    %c4_48 = arith.constant 4 : index
    %c1_49 = arith.constant 1 : index
    %c0_50 = arith.constant 0 : index
    %c0_51 = arith.constant 0 : index
    %44 = vector.load %arg4[%c0_47, %c4_48, %c1_49, %c0_50, %c0_51] : memref<1x36x2x4x16xf32, #tpu.memory_space<vmem>>, vector<1x1x1x4x16xf32>
    %45 = vector.shape_cast %44 : vector<1x1x1x4x16xf32> to vector<4x16xf32>
    %46 = vector.shape_cast %43 : vector<4x16xf32> to vector<1x1x1x4x16xf32>
    tpu.vector_store %arg4[%c0_47, %c4_48, %c1_49, %c0_50, %c0_51], %46 {strides = array<i32>} : memref<1x36x2x4x16xf32, #tpu.memory_space<vmem>>, vector<1x1x1x4x16xf32>,
    %47 = vector.extract_strided_slice %6 {offsets = [8, 32], sizes = [4, 16], strides = [1, 1]} : vector<16x256xf32> to vector<4x16xf32>
    %c0_52 = arith.constant 0 : index
    %c5 = arith.constant 5 : index
    %c0_53 = arith.constant 0 : index
    %c0_54 = arith.constant 0 : index
    %c0_55 = arith.constant 0 : index
    %48 = vector.load %arg4[%c0_52, %c5, %c0_53, %c0_54, %c0_55] : memref<1x36x2x4x16xf32, #tpu.memory_space<vmem>>, vector<1x1x1x4x16xf32>
    %49 = vector.shape_cast %48 : vector<1x1x1x4x16xf32> to vector<4x16xf32>
    %50 = vector.shape_cast %47 : vector<4x16xf32> to vector<1x1x1x4x16xf32>
    tpu.vector_store %arg4[%c0_52, %c5, %c0_53, %c0_54, %c0_55], %50 {strides = array<i32>} : memref<1x36x2x4x16xf32, #tpu.memory_space<vmem>>, vector<1x1x1x4x16xf32>,
    %51 = vector.extract_strided_slice %6 {offsets = [12, 32], sizes = [4, 16], strides = [1, 1]} : vector<16x256xf32> to vector<4x16xf32>
    %c0_56 = arith.constant 0 : index
    %c5_57 = arith.constant 5 : index
    %c1_58 = arith.constant 1 : index
    %c0_59 = arith.constant 0 : index
    %c0_60 = arith.constant 0 : index
    %52 = vector.load %arg4[%c0_56, %c5_57, %c1_58, %c0_59, %c0_60] : memref<1x36x2x4x16xf32, #tpu.memory_space<vmem>>, vector<1x1x1x4x16xf32>
    %53 = vector.shape_cast %52 : vector<1x1x1x4x16xf32> to vector<4x16xf32>
    %54 = vector.shape_cast %51 : vector<4x16xf32> to vector<1x1x1x4x16xf32>
    tpu.vector_store %arg4[%c0_56, %c5_57, %c1_58, %c0_59, %c0_60], %54 {strides = array<i32>} : memref<1x36x2x4x16xf32, #tpu.memory_space<vmem>>, vector<1x1x1x4x16xf32>,
    %55 = vector.extract_strided_slice %6 {offsets = [0, 48], sizes = [4, 16], strides = [1, 1]} : vector<16x256xf32> to vector<4x16xf32>
    %c0_61 = arith.constant 0 : index
    %c6 = arith.constant 6 : index
    %c0_62 = arith.constant 0 : index
    %c0_63 = arith.constant 0 : index
    %c0_64 = arith.constant 0 : index
    %56 = vector.load %arg4[%c0_61, %c6, %c0_62, %c0_63, %c0_64] : memref<1x36x2x4x16xf32, #tpu.memory_space<vmem>>, vector<1x1x1x4x16xf32>
    %57 = vector.shape_cast %56 : vector<1x1x1x4x16xf32> to vector<4x16xf32>
    %58 = vector.shape_cast %55 : vector<4x16xf32> to vector<1x1x1x4x16xf32>
    tpu.vector_store %arg4[%c0_61, %c6, %c0_62, %c0_63, %c0_64], %58 {strides = array<i32>} : memref<1x36x2x4x16xf32, #tpu.memory_space<vmem>>, vector<1x1x1x4x16xf32>,
    %59 = vector.extract_strided_slice %6 {offsets = [4, 48], sizes = [4, 16], strides = [1, 1]} : vector<16x256xf32> to vector<4x16xf32>
    %c0_65 = arith.constant 0 : index
    %c6_66 = arith.constant 6 : index
    %c1_67 = arith.constant 1 : index
    %c0_68 = arith.constant 0 : index
    %c0_69 = arith.constant 0 : index
    %60 = vector.load %arg4[%c0_65, %c6_66, %c1_67, %c0_68, %c0_69] : memref<1x36x2x4x16xf32, #tpu.memory_space<vmem>>, vector<1x1x1x4x16xf32>
    %61 = vector.shape_cast %60 : vector<1x1x1x4x16xf32> to vector<4x16xf32>
    %62 = vector.shape_cast %59 : vector<4x16xf32> to vector<1x1x1x4x16xf32>
    tpu.vector_store %arg4[%c0_65, %c6_66, %c1_67, %c0_68, %c0_69], %62 {strides = array<i32>} : memref<1x36x2x4x16xf32, #tpu.memory_space<vmem>>, vector<1x1x1x4x16xf32>,
    %63 = vector.extract_strided_slice %6 {offsets = [8, 48], sizes = [4, 16], strides = [1, 1]} : vector<16x256xf32> to vector<4x16xf32>
    %c0_70 = arith.constant 0 : index
    %c7 = arith.constant 7 : index
    %c0_71 = arith.constant 0 : index
    %c0_72 = arith.constant 0 : index
    %c0_73 = arith.constant 0 : index
    %64 = vector.load %arg4[%c0_70, %c7, %c0_71, %c0_72, %c0_73] : memref<1x36x2x4x16xf32, #tpu.memory_space<vmem>>, vector<1x1x1x4x16xf32>
    %65 = vector.shape_cast %64 : vector<1x1x1x4x16xf32> to vector<4x16xf32>
    %66 = vector.shape_cast %63 : vector<4x16xf32> to vector<1x1x1x4x16xf32>
    tpu.vector_store %arg4[%c0_70, %c7, %c0_71, %c0_72, %c0_73], %66 {strides = array<i32>} : memref<1x36x2x4x16xf32, #tpu.memory_space<vmem>>, vector<1x1x1x4x16xf32>,
    %67 = vector.extract_strided_slice %6 {offsets = [12, 48], sizes = [4, 16], strides = [1, 1]} : vector<16x256xf32> to vector<4x16xf32>
    %c0_74 = arith.constant 0 : index
    %c7_75 = arith.constant 7 : index
    %c1_76 = arith.constant 1 : index
    %c0_77 = arith.constant 0 : index
    %c0_78 = arith.constant 0 : index
    %68 = vector.load %arg4[%c0_74, %c7_75, %c1_76, %c0_77, %c0_78] : memref<1x36x2x4x16xf32, #tpu.memory_space<vmem>>, vector<1x1x1x4x16xf32>
    %69 = vector.shape_cast %68 : vector<1x1x1x4x16xf32> to vector<4x16xf32>
    %70 = vector.shape_cast %67 : vector<4x16xf32> to vector<1x1x1x4x16xf32>
    tpu.vector_store %arg4[%c0_74, %c7_75, %c1_76, %c0_77, %c0_78], %70 {strides = array<i32>} : memref<1x36x2x4x16xf32, #tpu.memory_space<vmem>>, vector<1x1x1x4x16xf32>,
    %71 = vector.extract_strided_slice %6 {offsets = [0, 64], sizes = [4, 16], strides = [1, 1]} : vector<16x256xf32> to vector<4x16xf32>
    %c0_79 = arith.constant 0 : index
    %c8 = arith.constant 8 : index
    %c0_80 = arith.constant 0 : index
    %c0_81 = arith.constant 0 : index
    %c0_82 = arith.constant 0 : index
    %72 = vector.load %arg4[%c0_79, %c8, %c0_80, %c0_81, %c0_82] : memref<1x36x2x4x16xf32, #tpu.memory_space<vmem>>, vector<1x1x1x4x16xf32>
    %73 = vector.shape_cast %72 : vector<1x1x1x4x16xf32> to vector<4x16xf32>
    %74 = vector.shape_cast %71 : vector<4x16xf32> to vector<1x1x1x4x16xf32>
    tpu.vector_store %arg4[%c0_79, %c8, %c0_80, %c0_81, %c0_82], %74 {strides = array<i32>} : memref<1x36x2x4x16xf32, #tpu.memory_space<vmem>>, vector<1x1x1x4x16xf32>,
    %75 = vector.extract_strided_slice %6 {offsets = [4, 64], sizes = [4, 16], strides = [1, 1]} : vector<16x256xf32> to vector<4x16xf32>
    %c0_83 = arith.constant 0 : index
    %c8_84 = arith.constant 8 : index
    %c1_85 = arith.constant 1 : index
    %c0_86 = arith.constant 0 : index
    %c0_87 = arith.constant 0 : index
    %76 = vector.load %arg4[%c0_83, %c8_84, %c1_85, %c0_86, %c0_87] : memref<1x36x2x4x16xf32, #tpu.memory_space<vmem>>, vector<1x1x1x4x16xf32>
    %77 = vector.shape_cast %76 : vector<1x1x1x4x16xf32> to vector<4x16xf32>
    %78 = vector.shape_cast %75 : vector<4x16xf32> to vector<1x1x1x4x16xf32>
    tpu.vector_store %arg4[%c0_83, %c8_84, %c1_85, %c0_86, %c0_87], %78 {strides = array<i32>} : memref<1x36x2x4x16xf32, #tpu.memory_space<vmem>>, vector<1x1x1x4x16xf32>,
    %79 = vector.extract_strided_slice %6 {offsets = [8, 64], sizes = [4, 16], strides = [1, 1]} : vector<16x256xf32> to vector<4x16xf32>
    %c0_88 = arith.constant 0 : index
    %c9 = arith.constant 9 : index
    %c0_89 = arith.constant 0 : index
    %c0_90 = arith.constant 0 : index
    %c0_91 = arith.constant 0 : index
    %80 = vector.load %arg4[%c0_88, %c9, %c0_89, %c0_90, %c0_91] : memref<1x36x2x4x16xf32, #tpu.memory_space<vmem>>, vector<1x1x1x4x16xf32>
    %81 = vector.shape_cast %80 : vector<1x1x1x4x16xf32> to vector<4x16xf32>
    %82 = vector.shape_cast %79 : vector<4x16xf32> to vector<1x1x1x4x16xf32>
    tpu.vector_store %arg4[%c0_88, %c9, %c0_89, %c0_90, %c0_91], %82 {strides = array<i32>} : memref<1x36x2x4x16xf32, #tpu.memory_space<vmem>>, vector<1x1x1x4x16xf32>,
    %83 = vector.extract_strided_slice %6 {offsets = [12, 64], sizes = [4, 16], strides = [1, 1]} : vector<16x256xf32> to vector<4x16xf32>
    %c0_92 = arith.constant 0 : index
    %c9_93 = arith.constant 9 : index
    %c1_94 = arith.constant 1 : index
    %c0_95 = arith.constant 0 : index
    %c0_96 = arith.constant 0 : index
    %84 = vector.load %arg4[%c0_92, %c9_93, %c1_94, %c0_95, %c0_96] : memref<1x36x2x4x16xf32, #tpu.memory_space<vmem>>, vector<1x1x1x4x16xf32>
    %85 = vector.shape_cast %84 : vector<1x1x1x4x16xf32> to vector<4x16xf32>
    %86 = vector.shape_cast %83 : vector<4x16xf32> to vector<1x1x1x4x16xf32>
    tpu.vector_store %arg4[%c0_92, %c9_93, %c1_94, %c0_95, %c0_96], %86 {strides = array<i32>} : memref<1x36x2x4x16xf32, #tpu.memory_space<vmem>>, vector<1x1x1x4x16xf32>,
    %87 = vector.extract_strided_slice %6 {offsets = [0, 80], sizes = [4, 16], strides = [1, 1]} : vector<16x256xf32> to vector<4x16xf32>
    %c0_97 = arith.constant 0 : index
    %c10 = arith.constant 10 : index
    %c0_98 = arith.constant 0 : index
    %c0_99 = arith.constant 0 : index
    %c0_100 = arith.constant 0 : index
    %88 = vector.load %arg4[%c0_97, %c10, %c0_98, %c0_99, %c0_100] : memref<1x36x2x4x16xf32, #tpu.memory_space<vmem>>, vector<1x1x1x4x16xf32>
    %89 = vector.shape_cast %88 : vector<1x1x1x4x16xf32> to vector<4x16xf32>
    %90 = vector.shape_cast %87 : vector<4x16xf32> to vector<1x1x1x4x16xf32>
    tpu.vector_store %arg4[%c0_97, %c10, %c0_98, %c0_99, %c0_100], %90 {strides = array<i32>} : memref<1x36x2x4x16xf32, #tpu.memory_space<vmem>>, vector<1x1x1x4x16xf32>,
    %91 = vector.extract_strided_slice %6 {offsets = [4, 80], sizes = [4, 16], strides = [1, 1]} : vector<16x256xf32> to vector<4x16xf32>
    %c0_101 = arith.constant 0 : index
    %c10_102 = arith.constant 10 : index
    %c1_103 = arith.constant 1 : index
    %c0_104 = arith.constant 0 : index
    %c0_105 = arith.constant 0 : index
    %92 = vector.load %arg4[%c0_101, %c10_102, %c1_103, %c0_104, %c0_105] : memref<1x36x2x4x16xf32, #tpu.memory_space<vmem>>, vector<1x1x1x4x16xf32>
    %93 = vector.shape_cast %92 : vector<1x1x1x4x16xf32> to vector<4x16xf32>
    %94 = vector.shape_cast %91 : vector<4x16xf32> to vector<1x1x1x4x16xf32>
    tpu.vector_store %arg4[%c0_101, %c10_102, %c1_103, %c0_104, %c0_105], %94 {strides = array<i32>} : memref<1x36x2x4x16xf32, #tpu.memory_space<vmem>>, vector<1x1x1x4x16xf32>,
    %95 = vector.extract_strided_slice %6 {offsets = [8, 80], sizes = [4, 16], strides = [1, 1]} : vector<16x256xf32> to vector<4x16xf32>
    %c0_106 = arith.constant 0 : index
    %c11 = arith.constant 11 : index
    %c0_107 = arith.constant 0 : index
    %c0_108 = arith.constant 0 : index
    %c0_109 = arith.constant 0 : index
    %96 = vector.load %arg4[%c0_106, %c11, %c0_107, %c0_108, %c0_109] : memref<1x36x2x4x16xf32, #tpu.memory_space<vmem>>, vector<1x1x1x4x16xf32>
    %97 = vector.shape_cast %96 : vector<1x1x1x4x16xf32> to vector<4x16xf32>
    %98 = vector.shape_cast %95 : vector<4x16xf32> to vector<1x1x1x4x16xf32>
    tpu.vector_store %arg4[%c0_106, %c11, %c0_107, %c0_108, %c0_109], %98 {strides = array<i32>} : memref<1x36x2x4x16xf32, #tpu.memory_space<vmem>>, vector<1x1x1x4x16xf32>,
    %99 = vector.extract_strided_slice %6 {offsets = [12, 80], sizes = [4, 16], strides = [1, 1]} : vector<16x256xf32> to vector<4x16xf32>
    %c0_110 = arith.constant 0 : index
    %c11_111 = arith.constant 11 : index
    %c1_112 = arith.constant 1 : index
    %c0_113 = arith.constant 0 : index
    %c0_114 = arith.constant 0 : index
    %100 = vector.load %arg4[%c0_110, %c11_111, %c1_112, %c0_113, %c0_114] : memref<1x36x2x4x16xf32, #tpu.memory_space<vmem>>, vector<1x1x1x4x16xf32>
    %101 = vector.shape_cast %100 : vector<1x1x1x4x16xf32> to vector<4x16xf32>
    %102 = vector.shape_cast %99 : vector<4x16xf32> to vector<1x1x1x4x16xf32>
    tpu.vector_store %arg4[%c0_110, %c11_111, %c1_112, %c0_113, %c0_114], %102 {strides = array<i32>} : memref<1x36x2x4x16xf32, #tpu.memory_space<vmem>>, vector<1x1x1x4x16xf32>,
    %103 = vector.extract_strided_slice %6 {offsets = [0, 96], sizes = [4, 16], strides = [1, 1]} : vector<16x256xf32> to vector<4x16xf32>
    %c0_115 = arith.constant 0 : index
    %c12 = arith.constant 12 : index
    %c0_116 = arith.constant 0 : index
    %c0_117 = arith.constant 0 : index
    %c0_118 = arith.constant 0 : index
    %104 = vector.load %arg4[%c0_115, %c12, %c0_116, %c0_117, %c0_118] : memref<1x36x2x4x16xf32, #tpu.memory_space<vmem>>, vector<1x1x1x4x16xf32>
    %105 = vector.shape_cast %104 : vector<1x1x1x4x16xf32> to vector<4x16xf32>
    %106 = vector.shape_cast %103 : vector<4x16xf32> to vector<1x1x1x4x16xf32>
    tpu.vector_store %arg4[%c0_115, %c12, %c0_116, %c0_117, %c0_118], %106 {strides = array<i32>} : memref<1x36x2x4x16xf32, #tpu.memory_space<vmem>>, vector<1x1x1x4x16xf32>,
    %107 = vector.extract_strided_slice %6 {offsets = [4, 96], sizes = [4, 16], strides = [1, 1]} : vector<16x256xf32> to vector<4x16xf32>
    %c0_119 = arith.constant 0 : index
    %c12_120 = arith.constant 12 : index
    %c1_121 = arith.constant 1 : index
    %c0_122 = arith.constant 0 : index
    %c0_123 = arith.constant 0 : index
    %108 = vector.load %arg4[%c0_119, %c12_120, %c1_121, %c0_122, %c0_123] : memref<1x36x2x4x16xf32, #tpu.memory_space<vmem>>, vector<1x1x1x4x16xf32>
    %109 = vector.shape_cast %108 : vector<1x1x1x4x16xf32> to vector<4x16xf32>
    %110 = vector.shape_cast %107 : vector<4x16xf32> to vector<1x1x1x4x16xf32>
    tpu.vector_store %arg4[%c0_119, %c12_120, %c1_121, %c0_122, %c0_123], %110 {strides = array<i32>} : memref<1x36x2x4x16xf32, #tpu.memory_space<vmem>>, vector<1x1x1x4x16xf32>,
    %111 = vector.extract_strided_slice %6 {offsets = [8, 96], sizes = [4, 16], strides = [1, 1]} : vector<16x256xf32> to vector<4x16xf32>
    %c0_124 = arith.constant 0 : index
    %c13 = arith.constant 13 : index
    %c0_125 = arith.constant 0 : index
    %c0_126 = arith.constant 0 : index
    %c0_127 = arith.constant 0 : index
    %112 = vector.load %arg4[%c0_124, %c13, %c0_125, %c0_126, %c0_127] : memref<1x36x2x4x16xf32, #tpu.memory_space<vmem>>, vector<1x1x1x4x16xf32>
    %113 = vector.shape_cast %112 : vector<1x1x1x4x16xf32> to vector<4x16xf32>
    %114 = vector.shape_cast %111 : vector<4x16xf32> to vector<1x1x1x4x16xf32>
    tpu.vector_store %arg4[%c0_124, %c13, %c0_125, %c0_126, %c0_127], %114 {strides = array<i32>} : memref<1x36x2x4x16xf32, #tpu.memory_space<vmem>>, vector<1x1x1x4x16xf32>,
    %115 = vector.extract_strided_slice %6 {offsets = [12, 96], sizes = [4, 16], strides = [1, 1]} : vector<16x256xf32> to vector<4x16xf32>
    %c0_128 = arith.constant 0 : index
    %c13_129 = arith.constant 13 : index
    %c1_130 = arith.constant 1 : index
    %c0_131 = arith.constant 0 : index
    %c0_132 = arith.constant 0 : index
    %116 = vector.load %arg4[%c0_128, %c13_129, %c1_130, %c0_131, %c0_132] : memref<1x36x2x4x16xf32, #tpu.memory_space<vmem>>, vector<1x1x1x4x16xf32>
    %117 = vector.shape_cast %116 : vector<1x1x1x4x16xf32> to vector<4x16xf32>
    %118 = vector.shape_cast %115 : vector<4x16xf32> to vector<1x1x1x4x16xf32>
    tpu.vector_store %arg4[%c0_128, %c13_129, %c1_130, %c0_131, %c0_132], %118 {strides = array<i32>} : memref<1x36x2x4x16xf32, #tpu.memory_space<vmem>>, vector<1x1x1x4x16xf32>,
    %119 = vector.extract_strided_slice %6 {offsets = [0, 112], sizes = [4, 16], strides = [1, 1]} : vector<16x256xf32> to vector<4x16xf32>
    %c0_133 = arith.constant 0 : index
    %c14 = arith.constant 14 : index
    %c0_134 = arith.constant 0 : index
    %c0_135 = arith.constant 0 : index
    %c0_136 = arith.constant 0 : index
    %120 = vector.load %arg4[%c0_133, %c14, %c0_134, %c0_135, %c0_136] : memref<1x36x2x4x16xf32, #tpu.memory_space<vmem>>, vector<1x1x1x4x16xf32>
    %121 = vector.shape_cast %120 : vector<1x1x1x4x16xf32> to vector<4x16xf32>
    %122 = vector.shape_cast %119 : vector<4x16xf32> to vector<1x1x1x4x16xf32>
    tpu.vector_store %arg4[%c0_133, %c14, %c0_134, %c0_135, %c0_136], %122 {strides = array<i32>} : memref<1x36x2x4x16xf32, #tpu.memory_space<vmem>>, vector<1x1x1x4x16xf32>,
    %123 = vector.extract_strided_slice %6 {offsets = [4, 112], sizes = [4, 16], strides = [1, 1]} : vector<16x256xf32> to vector<4x16xf32>
    %c0_137 = arith.constant 0 : index
    %c14_138 = arith.constant 14 : index
    %c1_139 = arith.constant 1 : index
    %c0_140 = arith.constant 0 : index
    %c0_141 = arith.constant 0 : index
    %124 = vector.load %arg4[%c0_137, %c14_138, %c1_139, %c0_140, %c0_141] : memref<1x36x2x4x16xf32, #tpu.memory_space<vmem>>, vector<1x1x1x4x16xf32>
    %125 = vector.shape_cast %124 : vector<1x1x1x4x16xf32> to vector<4x16xf32>
    %126 = vector.shape_cast %123 : vector<4x16xf32> to vector<1x1x1x4x16xf32>
    tpu.vector_store %arg4[%c0_137, %c14_138, %c1_139, %c0_140, %c0_141], %126 {strides = array<i32>} : memref<1x36x2x4x16xf32, #tpu.memory_space<vmem>>, vector<1x1x1x4x16xf32>,
    %127 = vector.extract_strided_slice %6 {offsets = [8, 112], sizes = [4, 16], strides = [1, 1]} : vector<16x256xf32> to vector<4x16xf32>
    %c0_142 = arith.constant 0 : index
    %c15 = arith.constant 15 : index
    %c0_143 = arith.constant 0 : index
    %c0_144 = arith.constant 0 : index
    %c0_145 = arith.constant 0 : index
    %128 = vector.load %arg4[%c0_142, %c15, %c0_143, %c0_144, %c0_145] : memref<1x36x2x4x16xf32, #tpu.memory_space<vmem>>, vector<1x1x1x4x16xf32>
    %129 = vector.shape_cast %128 : vector<1x1x1x4x16xf32> to vector<4x16xf32>
    %130 = vector.shape_cast %127 : vector<4x16xf32> to vector<1x1x1x4x16xf32>
    tpu.vector_store %arg4[%c0_142, %c15, %c0_143, %c0_144, %c0_145], %130 {strides = array<i32>} : memref<1x36x2x4x16xf32, #tpu.memory_space<vmem>>, vector<1x1x1x4x16xf32>,
    %131 = vector.extract_strided_slice %6 {offsets = [12, 112], sizes = [4, 16], strides = [1, 1]} : vector<16x256xf32> to vector<4x16xf32>
    %c0_146 = arith.constant 0 : index
    %c15_147 = arith.constant 15 : index
    %c1_148 = arith.constant 1 : index
    %c0_149 = arith.constant 0 : index
    %c0_150 = arith.constant 0 : index
    %132 = vector.load %arg4[%c0_146, %c15_147, %c1_148, %c0_149, %c0_150] : memref<1x36x2x4x16xf32, #tpu.memory_space<vmem>>, vector<1x1x1x4x16xf32>
    %133 = vector.shape_cast %132 : vector<1x1x1x4x16xf32> to vector<4x16xf32>
    %134 = vector.shape_cast %131 : vector<4x16xf32> to vector<1x1x1x4x16xf32>
    tpu.vector_store %arg4[%c0_146, %c15_147, %c1_148, %c0_149, %c0_150], %134 {strides = array<i32>} : memref<1x36x2x4x16xf32, #tpu.memory_space<vmem>>, vector<1x1x1x4x16xf32>,
    %135 = vector.extract_strided_slice %6 {offsets = [0, 128], sizes = [4, 16], strides = [1, 1]} : vector<16x256xf32> to vector<4x16xf32>
    %c0_151 = arith.constant 0 : index
    %c16 = arith.constant 16 : index
    %c0_152 = arith.constant 0 : index
    %c0_153 = arith.constant 0 : index
    %c0_154 = arith.constant 0 : index
    %136 = vector.load %arg4[%c0_151, %c16, %c0_152, %c0_153, %c0_154] : memref<1x36x2x4x16xf32, #tpu.memory_space<vmem>>, vector<1x1x1x4x16xf32>
    %137 = vector.shape_cast %136 : vector<1x1x1x4x16xf32> to vector<4x16xf32>
    %138 = vector.shape_cast %135 : vector<4x16xf32> to vector<1x1x1x4x16xf32>
    tpu.vector_store %arg4[%c0_151, %c16, %c0_152, %c0_153, %c0_154], %138 {strides = array<i32>} : memref<1x36x2x4x16xf32, #tpu.memory_space<vmem>>, vector<1x1x1x4x16xf32>,
    %139 = vector.extract_strided_slice %6 {offsets = [4, 128], sizes = [4, 16], strides = [1, 1]} : vector<16x256xf32> to vector<4x16xf32>
    %c0_155 = arith.constant 0 : index
    %c16_156 = arith.constant 16 : index
    %c1_157 = arith.constant 1 : index
    %c0_158 = arith.constant 0 : index
    %c0_159 = arith.constant 0 : index
    %140 = vector.load %arg4[%c0_155, %c16_156, %c1_157, %c0_158, %c0_159] : memref<1x36x2x4x16xf32, #tpu.memory_space<vmem>>, vector<1x1x1x4x16xf32>
    %141 = vector.shape_cast %140 : vector<1x1x1x4x16xf32> to vector<4x16xf32>
    %142 = vector.shape_cast %139 : vector<4x16xf32> to vector<1x1x1x4x16xf32>
    tpu.vector_store %arg4[%c0_155, %c16_156, %c1_157, %c0_158, %c0_159], %142 {strides = array<i32>} : memref<1x36x2x4x16xf32, #tpu.memory_space<vmem>>, vector<1x1x1x4x16xf32>,
    %143 = vector.extract_strided_slice %6 {offsets = [8, 128], sizes = [4, 16], strides = [1, 1]} : vector<16x256xf32> to vector<4x16xf32>
    %c0_160 = arith.constant 0 : index
    %c17 = arith.constant 17 : index
    %c0_161 = arith.constant 0 : index
    %c0_162 = arith.constant 0 : index
    %c0_163 = arith.constant 0 : index
    %144 = vector.load %arg4[%c0_160, %c17, %c0_161, %c0_162, %c0_163] : memref<1x36x2x4x16xf32, #tpu.memory_space<vmem>>, vector<1x1x1x4x16xf32>
    %145 = vector.shape_cast %144 : vector<1x1x1x4x16xf32> to vector<4x16xf32>
    %146 = vector.shape_cast %143 : vector<4x16xf32> to vector<1x1x1x4x16xf32>
    tpu.vector_store %arg4[%c0_160, %c17, %c0_161, %c0_162, %c0_163], %146 {strides = array<i32>} : memref<1x36x2x4x16xf32, #tpu.memory_space<vmem>>, vector<1x1x1x4x16xf32>,
    %147 = vector.extract_strided_slice %6 {offsets = [12, 128], sizes = [4, 16], strides = [1, 1]} : vector<16x256xf32> to vector<4x16xf32>
    %c0_164 = arith.constant 0 : index
    %c17_165 = arith.constant 17 : index
    %c1_166 = arith.constant 1 : index
    %c0_167 = arith.constant 0 : index
    %c0_168 = arith.constant 0 : index
    %148 = vector.load %arg4[%c0_164, %c17_165, %c1_166, %c0_167, %c0_168] : memref<1x36x2x4x16xf32, #tpu.memory_space<vmem>>, vector<1x1x1x4x16xf32>
    %149 = vector.shape_cast %148 : vector<1x1x1x4x16xf32> to vector<4x16xf32>
    %150 = vector.shape_cast %147 : vector<4x16xf32> to vector<1x1x1x4x16xf32>
    tpu.vector_store %arg4[%c0_164, %c17_165, %c1_166, %c0_167, %c0_168], %150 {strides = array<i32>} : memref<1x36x2x4x16xf32, #tpu.memory_space<vmem>>, vector<1x1x1x4x16xf32>,
    %151 = vector.extract_strided_slice %6 {offsets = [0, 144], sizes = [4, 16], strides = [1, 1]} : vector<16x256xf32> to vector<4x16xf32>
    %c0_169 = arith.constant 0 : index
    %c18 = arith.constant 18 : index
    %c0_170 = arith.constant 0 : index
    %c0_171 = arith.constant 0 : index
    %c0_172 = arith.constant 0 : index
    %152 = vector.load %arg4[%c0_169, %c18, %c0_170, %c0_171, %c0_172] : memref<1x36x2x4x16xf32, #tpu.memory_space<vmem>>, vector<1x1x1x4x16xf32>
    %153 = vector.shape_cast %152 : vector<1x1x1x4x16xf32> to vector<4x16xf32>
    %154 = vector.shape_cast %151 : vector<4x16xf32> to vector<1x1x1x4x16xf32>
    tpu.vector_store %arg4[%c0_169, %c18, %c0_170, %c0_171, %c0_172], %154 {strides = array<i32>} : memref<1x36x2x4x16xf32, #tpu.memory_space<vmem>>, vector<1x1x1x4x16xf32>,
    %155 = vector.extract_strided_slice %6 {offsets = [4, 144], sizes = [4, 16], strides = [1, 1]} : vector<16x256xf32> to vector<4x16xf32>
    %c0_173 = arith.constant 0 : index
    %c18_174 = arith.constant 18 : index
    %c1_175 = arith.constant 1 : index
    %c0_176 = arith.constant 0 : index
    %c0_177 = arith.constant 0 : index
    %156 = vector.load %arg4[%c0_173, %c18_174, %c1_175, %c0_176, %c0_177] : memref<1x36x2x4x16xf32, #tpu.memory_space<vmem>>, vector<1x1x1x4x16xf32>
    %157 = vector.shape_cast %156 : vector<1x1x1x4x16xf32> to vector<4x16xf32>
    %158 = vector.shape_cast %155 : vector<4x16xf32> to vector<1x1x1x4x16xf32>
    tpu.vector_store %arg4[%c0_173, %c18_174, %c1_175, %c0_176, %c0_177], %158 {strides = array<i32>} : memref<1x36x2x4x16xf32, #tpu.memory_space<vmem>>, vector<1x1x1x4x16xf32>,
    %159 = vector.extract_strided_slice %6 {offsets = [8, 144], sizes = [4, 16], strides = [1, 1]} : vector<16x256xf32> to vector<4x16xf32>
    %c0_178 = arith.constant 0 : index
    %c19 = arith.constant 19 : index
    %c0_179 = arith.constant 0 : index
    %c0_180 = arith.constant 0 : index
    %c0_181 = arith.constant 0 : index
    %160 = vector.load %arg4[%c0_178, %c19, %c0_179, %c0_180, %c0_181] : memref<1x36x2x4x16xf32, #tpu.memory_space<vmem>>, vector<1x1x1x4x16xf32>
    %161 = vector.shape_cast %160 : vector<1x1x1x4x16xf32> to vector<4x16xf32>
    %162 = vector.shape_cast %159 : vector<4x16xf32> to vector<1x1x1x4x16xf32>
    tpu.vector_store %arg4[%c0_178, %c19, %c0_179, %c0_180, %c0_181], %162 {strides = array<i32>} : memref<1x36x2x4x16xf32, #tpu.memory_space<vmem>>, vector<1x1x1x4x16xf32>,
    %163 = vector.extract_strided_slice %6 {offsets = [12, 144], sizes = [4, 16], strides = [1, 1]} : vector<16x256xf32> to vector<4x16xf32>
    %c0_182 = arith.constant 0 : index
    %c19_183 = arith.constant 19 : index
    %c1_184 = arith.constant 1 : index
    %c0_185 = arith.constant 0 : index
    %c0_186 = arith.constant 0 : index
    %164 = vector.load %arg4[%c0_182, %c19_183, %c1_184, %c0_185, %c0_186] : memref<1x36x2x4x16xf32, #tpu.memory_space<vmem>>, vector<1x1x1x4x16xf32>
    %165 = vector.shape_cast %164 : vector<1x1x1x4x16xf32> to vector<4x16xf32>
    %166 = vector.shape_cast %163 : vector<4x16xf32> to vector<1x1x1x4x16xf32>
    tpu.vector_store %arg4[%c0_182, %c19_183, %c1_184, %c0_185, %c0_186], %166 {strides = array<i32>} : memref<1x36x2x4x16xf32, #tpu.memory_space<vmem>>, vector<1x1x1x4x16xf32>,
    %167 = vector.extract_strided_slice %6 {offsets = [0, 160], sizes = [4, 16], strides = [1, 1]} : vector<16x256xf32> to vector<4x16xf32>
    %c0_187 = arith.constant 0 : index
    %c20 = arith.constant 20 : index
    %c0_188 = arith.constant 0 : index
    %c0_189 = arith.constant 0 : index
    %c0_190 = arith.constant 0 : index
    %168 = vector.load %arg4[%c0_187, %c20, %c0_188, %c0_189, %c0_190] : memref<1x36x2x4x16xf32, #tpu.memory_space<vmem>>, vector<1x1x1x4x16xf32>
    %169 = vector.shape_cast %168 : vector<1x1x1x4x16xf32> to vector<4x16xf32>
    %170 = vector.shape_cast %167 : vector<4x16xf32> to vector<1x1x1x4x16xf32>
    tpu.vector_store %arg4[%c0_187, %c20, %c0_188, %c0_189, %c0_190], %170 {strides = array<i32>} : memref<1x36x2x4x16xf32, #tpu.memory_space<vmem>>, vector<1x1x1x4x16xf32>,
    %171 = vector.extract_strided_slice %6 {offsets = [4, 160], sizes = [4, 16], strides = [1, 1]} : vector<16x256xf32> to vector<4x16xf32>
    %c0_191 = arith.constant 0 : index
    %c20_192 = arith.constant 20 : index
    %c1_193 = arith.constant 1 : index
    %c0_194 = arith.constant 0 : index
    %c0_195 = arith.constant 0 : index
    %172 = vector.load %arg4[%c0_191, %c20_192, %c1_193, %c0_194, %c0_195] : memref<1x36x2x4x16xf32, #tpu.memory_space<vmem>>, vector<1x1x1x4x16xf32>
    %173 = vector.shape_cast %172 : vector<1x1x1x4x16xf32> to vector<4x16xf32>
    %174 = vector.shape_cast %171 : vector<4x16xf32> to vector<1x1x1x4x16xf32>
    tpu.vector_store %arg4[%c0_191, %c20_192, %c1_193, %c0_194, %c0_195], %174 {strides = array<i32>} : memref<1x36x2x4x16xf32, #tpu.memory_space<vmem>>, vector<1x1x1x4x16xf32>,
    %175 = vector.extract_strided_slice %6 {offsets = [8, 160], sizes = [4, 16], strides = [1, 1]} : vector<16x256xf32> to vector<4x16xf32>
    %c0_196 = arith.constant 0 : index
    %c21 = arith.constant 21 : index
    %c0_197 = arith.constant 0 : index
    %c0_198 = arith.constant 0 : index
    %c0_199 = arith.constant 0 : index
    %176 = vector.load %arg4[%c0_196, %c21, %c0_197, %c0_198, %c0_199] : memref<1x36x2x4x16xf32, #tpu.memory_space<vmem>>, vector<1x1x1x4x16xf32>
    %177 = vector.shape_cast %176 : vector<1x1x1x4x16xf32> to vector<4x16xf32>
    %178 = vector.shape_cast %175 : vector<4x16xf32> to vector<1x1x1x4x16xf32>
    tpu.vector_store %arg4[%c0_196, %c21, %c0_197, %c0_198, %c0_199], %178 {strides = array<i32>} : memref<1x36x2x4x16xf32, #tpu.memory_space<vmem>>, vector<1x1x1x4x16xf32>,
    %179 = vector.extract_strided_slice %6 {offsets = [12, 160], sizes = [4, 16], strides = [1, 1]} : vector<16x256xf32> to vector<4x16xf32>
    %c0_200 = arith.constant 0 : index
    %c21_201 = arith.constant 21 : index
    %c1_202 = arith.constant 1 : index
    %c0_203 = arith.constant 0 : index
    %c0_204 = arith.constant 0 : index
    %180 = vector.load %arg4[%c0_200, %c21_201, %c1_202, %c0_203, %c0_204] : memref<1x36x2x4x16xf32, #tpu.memory_space<vmem>>, vector<1x1x1x4x16xf32>
    %181 = vector.shape_cast %180 : vector<1x1x1x4x16xf32> to vector<4x16xf32>
    %182 = vector.shape_cast %179 : vector<4x16xf32> to vector<1x1x1x4x16xf32>
    tpu.vector_store %arg4[%c0_200, %c21_201, %c1_202, %c0_203, %c0_204], %182 {strides = array<i32>} : memref<1x36x2x4x16xf32, #tpu.memory_space<vmem>>, vector<1x1x1x4x16xf32>,
    %183 = vector.extract_strided_slice %6 {offsets = [0, 176], sizes = [4, 16], strides = [1, 1]} : vector<16x256xf32> to vector<4x16xf32>
    %c0_205 = arith.constant 0 : index
    %c22 = arith.constant 22 : index
    %c0_206 = arith.constant 0 : index
    %c0_207 = arith.constant 0 : index
    %c0_208 = arith.constant 0 : index
    %184 = vector.load %arg4[%c0_205, %c22, %c0_206, %c0_207, %c0_208] : memref<1x36x2x4x16xf32, #tpu.memory_space<vmem>>, vector<1x1x1x4x16xf32>
    %185 = vector.shape_cast %184 : vector<1x1x1x4x16xf32> to vector<4x16xf32>
    %186 = vector.shape_cast %183 : vector<4x16xf32> to vector<1x1x1x4x16xf32>
    tpu.vector_store %arg4[%c0_205, %c22, %c0_206, %c0_207, %c0_208], %186 {strides = array<i32>} : memref<1x36x2x4x16xf32, #tpu.memory_space<vmem>>, vector<1x1x1x4x16xf32>,
    %187 = vector.extract_strided_slice %6 {offsets = [4, 176], sizes = [4, 16], strides = [1, 1]} : vector<16x256xf32> to vector<4x16xf32>
    %c0_209 = arith.constant 0 : index
    %c22_210 = arith.constant 22 : index
    %c1_211 = arith.constant 1 : index
    %c0_212 = arith.constant 0 : index
    %c0_213 = arith.constant 0 : index
    %188 = vector.load %arg4[%c0_209, %c22_210, %c1_211, %c0_212, %c0_213] : memref<1x36x2x4x16xf32, #tpu.memory_space<vmem>>, vector<1x1x1x4x16xf32>
    %189 = vector.shape_cast %188 : vector<1x1x1x4x16xf32> to vector<4x16xf32>
    %190 = vector.shape_cast %187 : vector<4x16xf32> to vector<1x1x1x4x16xf32>
    tpu.vector_store %arg4[%c0_209, %c22_210, %c1_211, %c0_212, %c0_213], %190 {strides = array<i32>} : memref<1x36x2x4x16xf32, #tpu.memory_space<vmem>>, vector<1x1x1x4x16xf32>,
    %191 = vector.extract_strided_slice %6 {offsets = [8, 176], sizes = [4, 16], strides = [1, 1]} : vector<16x256xf32> to vector<4x16xf32>
    %c0_214 = arith.constant 0 : index
    %c23 = arith.constant 23 : index
    %c0_215 = arith.constant 0 : index
    %c0_216 = arith.constant 0 : index
    %c0_217 = arith.constant 0 : index
    %192 = vector.load %arg4[%c0_214, %c23, %c0_215, %c0_216, %c0_217] : memref<1x36x2x4x16xf32, #tpu.memory_space<vmem>>, vector<1x1x1x4x16xf32>
    %193 = vector.shape_cast %192 : vector<1x1x1x4x16xf32> to vector<4x16xf32>
    %194 = vector.shape_cast %191 : vector<4x16xf32> to vector<1x1x1x4x16xf32>
    tpu.vector_store %arg4[%c0_214, %c23, %c0_215, %c0_216, %c0_217], %194 {strides = array<i32>} : memref<1x36x2x4x16xf32, #tpu.memory_space<vmem>>, vector<1x1x1x4x16xf32>,
    %195 = vector.extract_strided_slice %6 {offsets = [12, 176], sizes = [4, 16], strides = [1, 1]} : vector<16x256xf32> to vector<4x16xf32>
    %c0_218 = arith.constant 0 : index
    %c23_219 = arith.constant 23 : index
    %c1_220 = arith.constant 1 : index
    %c0_221 = arith.constant 0 : index
    %c0_222 = arith.constant 0 : index
    %196 = vector.load %arg4[%c0_218, %c23_219, %c1_220, %c0_221, %c0_222] : memref<1x36x2x4x16xf32, #tpu.memory_space<vmem>>, vector<1x1x1x4x16xf32>
    %197 = vector.shape_cast %196 : vector<1x1x1x4x16xf32> to vector<4x16xf32>
    %198 = vector.shape_cast %195 : vector<4x16xf32> to vector<1x1x1x4x16xf32>
    tpu.vector_store %arg4[%c0_218, %c23_219, %c1_220, %c0_221, %c0_222], %198 {strides = array<i32>} : memref<1x36x2x4x16xf32, #tpu.memory_space<vmem>>, vector<1x1x1x4x16xf32>,
    %199 = vector.extract_strided_slice %6 {offsets = [0, 192], sizes = [4, 16], strides = [1, 1]} : vector<16x256xf32> to vector<4x16xf32>
    %c0_223 = arith.constant 0 : index
    %c24 = arith.constant 24 : index
    %c0_224 = arith.constant 0 : index
    %c0_225 = arith.constant 0 : index
    %c0_226 = arith.constant 0 : index
    %200 = vector.load %arg4[%c0_223, %c24, %c0_224, %c0_225, %c0_226] : memref<1x36x2x4x16xf32, #tpu.memory_space<vmem>>, vector<1x1x1x4x16xf32>
    %201 = vector.shape_cast %200 : vector<1x1x1x4x16xf32> to vector<4x16xf32>
    %202 = vector.shape_cast %199 : vector<4x16xf32> to vector<1x1x1x4x16xf32>
    tpu.vector_store %arg4[%c0_223, %c24, %c0_224, %c0_225, %c0_226], %202 {strides = array<i32>} : memref<1x36x2x4x16xf32, #tpu.memory_space<vmem>>, vector<1x1x1x4x16xf32>,
    %203 = vector.extract_strided_slice %6 {offsets = [4, 192], sizes = [4, 16], strides = [1, 1]} : vector<16x256xf32> to vector<4x16xf32>
    %c0_227 = arith.constant 0 : index
    %c24_228 = arith.constant 24 : index
    %c1_229 = arith.constant 1 : index
    %c0_230 = arith.constant 0 : index
    %c0_231 = arith.constant 0 : index
    %204 = vector.load %arg4[%c0_227, %c24_228, %c1_229, %c0_230, %c0_231] : memref<1x36x2x4x16xf32, #tpu.memory_space<vmem>>, vector<1x1x1x4x16xf32>
    %205 = vector.shape_cast %204 : vector<1x1x1x4x16xf32> to vector<4x16xf32>
    %206 = vector.shape_cast %203 : vector<4x16xf32> to vector<1x1x1x4x16xf32>
    tpu.vector_store %arg4[%c0_227, %c24_228, %c1_229, %c0_230, %c0_231], %206 {strides = array<i32>} : memref<1x36x2x4x16xf32, #tpu.memory_space<vmem>>, vector<1x1x1x4x16xf32>,
    %207 = vector.extract_strided_slice %6 {offsets = [8, 192], sizes = [4, 16], strides = [1, 1]} : vector<16x256xf32> to vector<4x16xf32>
    %c0_232 = arith.constant 0 : index
    %c25 = arith.constant 25 : index
    %c0_233 = arith.constant 0 : index
    %c0_234 = arith.constant 0 : index
    %c0_235 = arith.constant 0 : index
    %208 = vector.load %arg4[%c0_232, %c25, %c0_233, %c0_234, %c0_235] : memref<1x36x2x4x16xf32, #tpu.memory_space<vmem>>, vector<1x1x1x4x16xf32>
    %209 = vector.shape_cast %208 : vector<1x1x1x4x16xf32> to vector<4x16xf32>
    %210 = vector.shape_cast %207 : vector<4x16xf32> to vector<1x1x1x4x16xf32>
    tpu.vector_store %arg4[%c0_232, %c25, %c0_233, %c0_234, %c0_235], %210 {strides = array<i32>} : memref<1x36x2x4x16xf32, #tpu.memory_space<vmem>>, vector<1x1x1x4x16xf32>,
    %211 = vector.extract_strided_slice %6 {offsets = [12, 192], sizes = [4, 16], strides = [1, 1]} : vector<16x256xf32> to vector<4x16xf32>
    %c0_236 = arith.constant 0 : index
    %c25_237 = arith.constant 25 : index
    %c1_238 = arith.constant 1 : index
    %c0_239 = arith.constant 0 : index
    %c0_240 = arith.constant 0 : index
    %212 = vector.load %arg4[%c0_236, %c25_237, %c1_238, %c0_239, %c0_240] : memref<1x36x2x4x16xf32, #tpu.memory_space<vmem>>, vector<1x1x1x4x16xf32>
    %213 = vector.shape_cast %212 : vector<1x1x1x4x16xf32> to vector<4x16xf32>
    %214 = vector.shape_cast %211 : vector<4x16xf32> to vector<1x1x1x4x16xf32>
    tpu.vector_store %arg4[%c0_236, %c25_237, %c1_238, %c0_239, %c0_240], %214 {strides = array<i32>} : memref<1x36x2x4x16xf32, #tpu.memory_space<vmem>>, vector<1x1x1x4x16xf32>,
    %215 = vector.extract_strided_slice %6 {offsets = [0, 208], sizes = [4, 16], strides = [1, 1]} : vector<16x256xf32> to vector<4x16xf32>
    %c0_241 = arith.constant 0 : index
    %c26 = arith.constant 26 : index
    %c0_242 = arith.constant 0 : index
    %c0_243 = arith.constant 0 : index
    %c0_244 = arith.constant 0 : index
    %216 = vector.load %arg4[%c0_241, %c26, %c0_242, %c0_243, %c0_244] : memref<1x36x2x4x16xf32, #tpu.memory_space<vmem>>, vector<1x1x1x4x16xf32>
    %217 = vector.shape_cast %216 : vector<1x1x1x4x16xf32> to vector<4x16xf32>
    %218 = vector.shape_cast %215 : vector<4x16xf32> to vector<1x1x1x4x16xf32>
    tpu.vector_store %arg4[%c0_241, %c26, %c0_242, %c0_243, %c0_244], %218 {strides = array<i32>} : memref<1x36x2x4x16xf32, #tpu.memory_space<vmem>>, vector<1x1x1x4x16xf32>,
    %219 = vector.extract_strided_slice %6 {offsets = [4, 208], sizes = [4, 16], strides = [1, 1]} : vector<16x256xf32> to vector<4x16xf32>
    %c0_245 = arith.constant 0 : index
    %c26_246 = arith.constant 26 : index
    %c1_247 = arith.constant 1 : index
    %c0_248 = arith.constant 0 : index
    %c0_249 = arith.constant 0 : index
    %220 = vector.load %arg4[%c0_245, %c26_246, %c1_247, %c0_248, %c0_249] : memref<1x36x2x4x16xf32, #tpu.memory_space<vmem>>, vector<1x1x1x4x16xf32>
    %221 = vector.shape_cast %220 : vector<1x1x1x4x16xf32> to vector<4x16xf32>
    %222 = vector.shape_cast %219 : vector<4x16xf32> to vector<1x1x1x4x16xf32>
    tpu.vector_store %arg4[%c0_245, %c26_246, %c1_247, %c0_248, %c0_249], %222 {strides = array<i32>} : memref<1x36x2x4x16xf32, #tpu.memory_space<vmem>>, vector<1x1x1x4x16xf32>,
    %223 = vector.extract_strided_slice %6 {offsets = [8, 208], sizes = [4, 16], strides = [1, 1]} : vector<16x256xf32> to vector<4x16xf32>
    %c0_250 = arith.constant 0 : index
    %c27 = arith.constant 27 : index
    %c0_251 = arith.constant 0 : index
    %c0_252 = arith.constant 0 : index
    %c0_253 = arith.constant 0 : index
    %224 = vector.load %arg4[%c0_250, %c27, %c0_251, %c0_252, %c0_253] : memref<1x36x2x4x16xf32, #tpu.memory_space<vmem>>, vector<1x1x1x4x16xf32>
    %225 = vector.shape_cast %224 : vector<1x1x1x4x16xf32> to vector<4x16xf32>
    %226 = vector.shape_cast %223 : vector<4x16xf32> to vector<1x1x1x4x16xf32>
    tpu.vector_store %arg4[%c0_250, %c27, %c0_251, %c0_252, %c0_253], %226 {strides = array<i32>} : memref<1x36x2x4x16xf32, #tpu.memory_space<vmem>>, vector<1x1x1x4x16xf32>,
    %227 = vector.extract_strided_slice %6 {offsets = [12, 208], sizes = [4, 16], strides = [1, 1]} : vector<16x256xf32> to vector<4x16xf32>
    %c0_254 = arith.constant 0 : index
    %c27_255 = arith.constant 27 : index
    %c1_256 = arith.constant 1 : index
    %c0_257 = arith.constant 0 : index
    %c0_258 = arith.constant 0 : index
    %228 = vector.load %arg4[%c0_254, %c27_255, %c1_256, %c0_257, %c0_258] : memref<1x36x2x4x16xf32, #tpu.memory_space<vmem>>, vector<1x1x1x4x16xf32>
    %229 = vector.shape_cast %228 : vector<1x1x1x4x16xf32> to vector<4x16xf32>
    %230 = vector.shape_cast %227 : vector<4x16xf32> to vector<1x1x1x4x16xf32>
    tpu.vector_store %arg4[%c0_254, %c27_255, %c1_256, %c0_257, %c0_258], %230 {strides = array<i32>} : memref<1x36x2x4x16xf32, #tpu.memory_space<vmem>>, vector<1x1x1x4x16xf32>,
    %231 = vector.extract_strided_slice %6 {offsets = [0, 224], sizes = [4, 16], strides = [1, 1]} : vector<16x256xf32> to vector<4x16xf32>
    %c0_259 = arith.constant 0 : index
    %c28 = arith.constant 28 : index
    %c0_260 = arith.constant 0 : index
    %c0_261 = arith.constant 0 : index
    %c0_262 = arith.constant 0 : index
    %232 = vector.load %arg4[%c0_259, %c28, %c0_260, %c0_261, %c0_262] : memref<1x36x2x4x16xf32, #tpu.memory_space<vmem>>, vector<1x1x1x4x16xf32>
    %233 = vector.shape_cast %232 : vector<1x1x1x4x16xf32> to vector<4x16xf32>
    %234 = vector.shape_cast %231 : vector<4x16xf32> to vector<1x1x1x4x16xf32>
    tpu.vector_store %arg4[%c0_259, %c28, %c0_260, %c0_261, %c0_262], %234 {strides = array<i32>} : memref<1x36x2x4x16xf32, #tpu.memory_space<vmem>>, vector<1x1x1x4x16xf32>,
    %235 = vector.extract_strided_slice %6 {offsets = [4, 224], sizes = [4, 16], strides = [1, 1]} : vector<16x256xf32> to vector<4x16xf32>
    %c0_263 = arith.constant 0 : index
    %c28_264 = arith.constant 28 : index
    %c1_265 = arith.constant 1 : index
    %c0_266 = arith.constant 0 : index
    %c0_267 = arith.constant 0 : index
    %236 = vector.load %arg4[%c0_263, %c28_264, %c1_265, %c0_266, %c0_267] : memref<1x36x2x4x16xf32, #tpu.memory_space<vmem>>, vector<1x1x1x4x16xf32>
    %237 = vector.shape_cast %236 : vector<1x1x1x4x16xf32> to vector<4x16xf32>
    %238 = vector.shape_cast %235 : vector<4x16xf32> to vector<1x1x1x4x16xf32>
    tpu.vector_store %arg4[%c0_263, %c28_264, %c1_265, %c0_266, %c0_267], %238 {strides = array<i32>} : memref<1x36x2x4x16xf32, #tpu.memory_space<vmem>>, vector<1x1x1x4x16xf32>,
    %239 = vector.extract_strided_slice %6 {offsets = [8, 224], sizes = [4, 16], strides = [1, 1]} : vector<16x256xf32> to vector<4x16xf32>
    %c0_268 = arith.constant 0 : index
    %c29 = arith.constant 29 : index
    %c0_269 = arith.constant 0 : index
    %c0_270 = arith.constant 0 : index
    %c0_271 = arith.constant 0 : index
    %240 = vector.load %arg4[%c0_268, %c29, %c0_269, %c0_270, %c0_271] : memref<1x36x2x4x16xf32, #tpu.memory_space<vmem>>, vector<1x1x1x4x16xf32>
    %241 = vector.shape_cast %240 : vector<1x1x1x4x16xf32> to vector<4x16xf32>
    %242 = vector.shape_cast %239 : vector<4x16xf32> to vector<1x1x1x4x16xf32>
    tpu.vector_store %arg4[%c0_268, %c29, %c0_269, %c0_270, %c0_271], %242 {strides = array<i32>} : memref<1x36x2x4x16xf32, #tpu.memory_space<vmem>>, vector<1x1x1x4x16xf32>,
    %243 = vector.extract_strided_slice %6 {offsets = [12, 224], sizes = [4, 16], strides = [1, 1]} : vector<16x256xf32> to vector<4x16xf32>
    %c0_272 = arith.constant 0 : index
    %c29_273 = arith.constant 29 : index
    %c1_274 = arith.constant 1 : index
    %c0_275 = arith.constant 0 : index
    %c0_276 = arith.constant 0 : index
    %244 = vector.load %arg4[%c0_272, %c29_273, %c1_274, %c0_275, %c0_276] : memref<1x36x2x4x16xf32, #tpu.memory_space<vmem>>, vector<1x1x1x4x16xf32>
    %245 = vector.shape_cast %244 : vector<1x1x1x4x16xf32> to vector<4x16xf32>
    %246 = vector.shape_cast %243 : vector<4x16xf32> to vector<1x1x1x4x16xf32>
    tpu.vector_store %arg4[%c0_272, %c29_273, %c1_274, %c0_275, %c0_276], %246 {strides = array<i32>} : memref<1x36x2x4x16xf32, #tpu.memory_space<vmem>>, vector<1x1x1x4x16xf32>,
    %247 = vector.extract_strided_slice %6 {offsets = [0, 240], sizes = [4, 16], strides = [1, 1]} : vector<16x256xf32> to vector<4x16xf32>
    %c0_277 = arith.constant 0 : index
    %c30 = arith.constant 30 : index
    %c0_278 = arith.constant 0 : index
    %c0_279 = arith.constant 0 : index
    %c0_280 = arith.constant 0 : index
    %248 = vector.load %arg4[%c0_277, %c30, %c0_278, %c0_279, %c0_280] : memref<1x36x2x4x16xf32, #tpu.memory_space<vmem>>, vector<1x1x1x4x16xf32>
    %249 = vector.shape_cast %248 : vector<1x1x1x4x16xf32> to vector<4x16xf32>
    %250 = vector.shape_cast %247 : vector<4x16xf32> to vector<1x1x1x4x16xf32>
    tpu.vector_store %arg4[%c0_277, %c30, %c0_278, %c0_279, %c0_280], %250 {strides = array<i32>} : memref<1x36x2x4x16xf32, #tpu.memory_space<vmem>>, vector<1x1x1x4x16xf32>,
    %251 = vector.extract_strided_slice %6 {offsets = [4, 240], sizes = [4, 16], strides = [1, 1]} : vector<16x256xf32> to vector<4x16xf32>
    %c0_281 = arith.constant 0 : index
    %c30_282 = arith.constant 30 : index
    %c1_283 = arith.constant 1 : index
    %c0_284 = arith.constant 0 : index
    %c0_285 = arith.constant 0 : index
    %252 = vector.load %arg4[%c0_281, %c30_282, %c1_283, %c0_284, %c0_285] : memref<1x36x2x4x16xf32, #tpu.memory_space<vmem>>, vector<1x1x1x4x16xf32>
    %253 = vector.shape_cast %252 : vector<1x1x1x4x16xf32> to vector<4x16xf32>
    %254 = vector.shape_cast %251 : vector<4x16xf32> to vector<1x1x1x4x16xf32>
    tpu.vector_store %arg4[%c0_281, %c30_282, %c1_283, %c0_284, %c0_285], %254 {strides = array<i32>} : memref<1x36x2x4x16xf32, #tpu.memory_space<vmem>>, vector<1x1x1x4x16xf32>,
    %255 = vector.extract_strided_slice %6 {offsets = [8, 240], sizes = [4, 16], strides = [1, 1]} : vector<16x256xf32> to vector<4x16xf32>
    %c0_286 = arith.constant 0 : index
    %c31 = arith.constant 31 : index
    %c0_287 = arith.constant 0 : index
    %c0_288 = arith.constant 0 : index
    %c0_289 = arith.constant 0 : index
    %256 = vector.load %arg4[%c0_286, %c31, %c0_287, %c0_288, %c0_289] : memref<1x36x2x4x16xf32, #tpu.memory_space<vmem>>, vector<1x1x1x4x16xf32>
    %257 = vector.shape_cast %256 : vector<1x1x1x4x16xf32> to vector<4x16xf32>
    %258 = vector.shape_cast %255 : vector<4x16xf32> to vector<1x1x1x4x16xf32>
    tpu.vector_store %arg4[%c0_286, %c31, %c0_287, %c0_288, %c0_289], %258 {strides = array<i32>} : memref<1x36x2x4x16xf32, #tpu.memory_space<vmem>>, vector<1x1x1x4x16xf32>,
    %259 = vector.extract_strided_slice %6 {offsets = [12, 240], sizes = [4, 16], strides = [1, 1]} : vector<16x256xf32> to vector<4x16xf32>
    %c0_290 = arith.constant 0 : index
    %c31_291 = arith.constant 31 : index
    %c1_292 = arith.constant 1 : index
    %c0_293 = arith.constant 0 : index
    %c0_294 = arith.constant 0 : index
    %260 = vector.load %arg4[%c0_290, %c31_291, %c1_292, %c0_293, %c0_294] : memref<1x36x2x4x16xf32, #tpu.memory_space<vmem>>, vector<1x1x1x4x16xf32>
    %261 = vector.shape_cast %260 : vector<1x1x1x4x16xf32> to vector<4x16xf32>
    %262 = vector.shape_cast %259 : vector<4x16xf32> to vector<1x1x1x4x16xf32>
    tpu.vector_store %arg4[%c0_290, %c31_291, %c1_292, %c0_293, %c0_294], %262 {strides = array<i32>} : memref<1x36x2x4x16xf32, #tpu.memory_space<vmem>>, vector<1x1x1x4x16xf32>,
    %cst_295 = arith.constant 0.000000e+00 : f32
    %263 = vector.broadcast %cst_295 : f32 to vector<4x16xf32>
    %c0_296 = arith.constant 0 : index
    %c32 = arith.constant 32 : index
    %c0_297 = arith.constant 0 : index
    %c0_298 = arith.constant 0 : index
    %c0_299 = arith.constant 0 : index
    %264 = vector.load %arg4[%c0_296, %c32, %c0_297, %c0_298, %c0_299] : memref<1x36x2x4x16xf32, #tpu.memory_space<vmem>>, vector<1x1x1x4x16xf32>
    %265 = vector.shape_cast %264 : vector<1x1x1x4x16xf32> to vector<4x16xf32>
    %266 = vector.shape_cast %263 : vector<4x16xf32> to vector<1x1x1x4x16xf32>
    tpu.vector_store %arg4[%c0_296, %c32, %c0_297, %c0_298, %c0_299], %266 {strides = array<i32>} : memref<1x36x2x4x16xf32, #tpu.memory_space<vmem>>, vector<1x1x1x4x16xf32>,
    %c0_300 = arith.constant 0 : index
    %c32_301 = arith.constant 32 : index
    %c1_302 = arith.constant 1 : index
    %c0_303 = arith.constant 0 : index
    %c0_304 = arith.constant 0 : index
    %267 = vector.load %arg4[%c0_300, %c32_301, %c1_302, %c0_303, %c0_304] : memref<1x36x2x4x16xf32, #tpu.memory_space<vmem>>, vector<1x1x1x4x16xf32>
    %268 = vector.shape_cast %267 : vector<1x1x1x4x16xf32> to vector<4x16xf32>
    %269 = vector.shape_cast %263 : vector<4x16xf32> to vector<1x1x1x4x16xf32>
    tpu.vector_store %arg4[%c0_300, %c32_301, %c1_302, %c0_303, %c0_304], %269 {strides = array<i32>} : memref<1x36x2x4x16xf32, #tpu.memory_space<vmem>>, vector<1x1x1x4x16xf32>,
    %c0_305 = arith.constant 0 : index
    %c33 = arith.constant 33 : index
    %c0_306 = arith.constant 0 : index
    %c0_307 = arith.constant 0 : index
    %c0_308 = arith.constant 0 : index
    %270 = vector.load %arg4[%c0_305, %c33, %c0_306, %c0_307, %c0_308] : memref<1x36x2x4x16xf32, #tpu.memory_space<vmem>>, vector<1x1x1x4x16xf32>
    %271 = vector.shape_cast %270 : vector<1x1x1x4x16xf32> to vector<4x16xf32>
    %272 = vector.shape_cast %263 : vector<4x16xf32> to vector<1x1x1x4x16xf32>
    tpu.vector_store %arg4[%c0_305, %c33, %c0_306, %c0_307, %c0_308], %272 {strides = array<i32>} : memref<1x36x2x4x16xf32, #tpu.memory_space<vmem>>, vector<1x1x1x4x16xf32>,
    %c0_309 = arith.constant 0 : index
    %c33_310 = arith.constant 33 : index
    %c1_311 = arith.constant 1 : index
    %c0_312 = arith.constant 0 : index
    %c0_313 = arith.constant 0 : index
    %273 = vector.load %arg4[%c0_309, %c33_310, %c1_311, %c0_312, %c0_313] : memref<1x36x2x4x16xf32, #tpu.memory_space<vmem>>, vector<1x1x1x4x16xf32>
    %274 = vector.shape_cast %273 : vector<1x1x1x4x16xf32> to vector<4x16xf32>
    %275 = vector.shape_cast %263 : vector<4x16xf32> to vector<1x1x1x4x16xf32>
    tpu.vector_store %arg4[%c0_309, %c33_310, %c1_311, %c0_312, %c0_313], %275 {strides = array<i32>} : memref<1x36x2x4x16xf32, #tpu.memory_space<vmem>>, vector<1x1x1x4x16xf32>,
    %c0_314 = arith.constant 0 : index
    %c34 = arith.constant 34 : index
    %c0_315 = arith.constant 0 : index
    %c0_316 = arith.constant 0 : index
    %c0_317 = arith.constant 0 : index
    %276 = vector.load %arg4[%c0_314, %c34, %c0_315, %c0_316, %c0_317] : memref<1x36x2x4x16xf32, #tpu.memory_space<vmem>>, vector<1x1x1x4x16xf32>
    %277 = vector.shape_cast %276 : vector<1x1x1x4x16xf32> to vector<4x16xf32>
    %278 = vector.shape_cast %263 : vector<4x16xf32> to vector<1x1x1x4x16xf32>
    tpu.vector_store %arg4[%c0_314, %c34, %c0_315, %c0_316, %c0_317], %278 {strides = array<i32>} : memref<1x36x2x4x16xf32, #tpu.memory_space<vmem>>, vector<1x1x1x4x16xf32>,
    %c0_318 = arith.constant 0 : index
    %c34_319 = arith.constant 34 : index
    %c1_320 = arith.constant 1 : index
    %c0_321 = arith.constant 0 : index
    %c0_322 = arith.constant 0 : index
    %279 = vector.load %arg4[%c0_318, %c34_319, %c1_320, %c0_321, %c0_322] : memref<1x36x2x4x16xf32, #tpu.memory_space<vmem>>, vector<1x1x1x4x16xf32>
    %280 = vector.shape_cast %279 : vector<1x1x1x4x16xf32> to vector<4x16xf32>
    %281 = vector.shape_cast %263 : vector<4x16xf32> to vector<1x1x1x4x16xf32>
    tpu.vector_store %arg4[%c0_318, %c34_319, %c1_320, %c0_321, %c0_322], %281 {strides = array<i32>} : memref<1x36x2x4x16xf32, #tpu.memory_space<vmem>>, vector<1x1x1x4x16xf32>,
    %c0_323 = arith.constant 0 : index
    %c35 = arith.constant 35 : index
    %c0_324 = arith.constant 0 : index
    %c0_325 = arith.constant 0 : index
    %c0_326 = arith.constant 0 : index
    %282 = vector.load %arg4[%c0_323, %c35, %c0_324, %c0_325, %c0_326] : memref<1x36x2x4x16xf32, #tpu.memory_space<vmem>>, vector<1x1x1x4x16xf32>
    %283 = vector.shape_cast %282 : vector<1x1x1x4x16xf32> to vector<4x16xf32>
    %284 = vector.shape_cast %263 : vector<4x16xf32> to vector<1x1x1x4x16xf32>
    tpu.vector_store %arg4[%c0_323, %c35, %c0_324, %c0_325, %c0_326], %284 {strides = array<i32>} : memref<1x36x2x4x16xf32, #tpu.memory_space<vmem>>, vector<1x1x1x4x16xf32>,
    %c0_327 = arith.constant 0 : index
    %c35_328 = arith.constant 35 : index
    %c1_329 = arith.constant 1 : index
    %c0_330 = arith.constant 0 : index
    %c0_331 = arith.constant 0 : index
    %285 = vector.load %arg4[%c0_327, %c35_328, %c1_329, %c0_330, %c0_331] : memref<1x36x2x4x16xf32, #tpu.memory_space<vmem>>, vector<1x1x1x4x16xf32>
    %286 = vector.shape_cast %285 : vector<1x1x1x4x16xf32> to vector<4x16xf32>
    %287 = vector.shape_cast %263 : vector<4x16xf32> to vector<1x1x1x4x16xf32>
    tpu.vector_store %arg4[%c0_327, %c35_328, %c1_329, %c0_330, %c0_331], %287 {strides = array<i32>} : memref<1x36x2x4x16xf32, #tpu.memory_space<vmem>>, vector<1x1x1x4x16xf32>,
    return
  }
  func.func @transform_0(%arg0: i32) -> (i32, i32, i32) {
    %c0_i32 = arith.constant 0 : i32
    %c0_i32_0 = arith.constant 0 : i32
    %c0_i32_1 = arith.constant 0 : i32
    return %arg0, %c0_i32, %c0_i32_0 : i32, i32, i32
  }
  func.func @transform_1(%arg0: i32) -> (i32, i32) {
    %c0_i32 = arith.constant 0 : i32
    %c0_i32_0 = arith.constant 0 : i32
    %c0_i32_1 = arith.constant 0 : i32
    return %c0_i32, %c0_i32_0 : i32, i32
  }
  func.func @transform_2(%arg0: i32) -> (i32, i32) {
    %c0_i32 = arith.constant 0 : i32
    %c0_i32_0 = arith.constant 0 : i32
    %c0_i32_1 = arith.constant 0 : i32
    return %c0_i32, %c0_i32_0 : i32, i32
  }
  func.func @transform_3(%arg0: i32) -> (i32, i32, i32, i32, i32) {
    %c0_i32 = arith.constant 0 : i32
    %c0_i32_0 = arith.constant 0 : i32
    %c0_i32_1 = arith.constant 0 : i32
    %c0_i32_2 = arith.constant 0 : i32
    %c0_i32_3 = arith.constant 0 : i32
    return %arg0, %c0_i32, %c0_i32_0, %c0_i32_1, %c0_i32_2 : i32, i32, i32, i32, i32
  }
}

</mosaic_0001>

<bundles_post_ra>
// kernel: tpu_custom_call.1
= control target key start
LH: loop header
LB: loop body
LE: loop exit
PB: predicated region body
PF: predicated region fallthrough
CT: control target
= control target key end

     0   :  { %s682_s12 = smov 0   ;;  %s869_s0 = inlined_call_operand.vmem [shape: f32[2,4,256], index: 0, kind: input, shape index: {}]   ;;  %s870_s1 = inlined_call_operand.vmem [shape: f32[16,4], index: 1, kind: input, shape index: {}]   ;;  %s871_s2 = inlined_call_operand.vmem [shape: f32[16,1], index: 2, kind: input, shape index: {}]   ;;  %s872_s3 = inlined_call_operand.vmem [shape: f32[2,36,2,4,16], index: 3, kind: output, shape index: {}]  }
   0x1 LB: > { %s536_s13 = sadd.s32 4294967295, %s651_s12   ;;  %p540_p0 = scmp.ge.s32.totalorder %s651_s12, 1  ;;  %s651_s12 = sphi %s682_s12, %s13_s12  }
   0x2   : > { %p137_p1 = scmp.lt.s32.totalorder %s651_s12, 3 }
   0x4   : > { %p138_p2 = pnand %p540_p0, %p137_p1 }
   0x5   : > { %p161_p3 = scmp.lt.s32.totalorder (!%p138_p2), %s536_s13, 1  ;;  %s654_s30 = smov (!%p138_p2), 80  }
   0x6   : > { %141 = sbr.rel (%p138_p2) target bundleno = 343 (0x157), region = 32  ;;  %s655_s4 = smov (!%p138_p2), 96  }
   0x7   : > { %s656_s5 = smov (!%p138_p2), 112   ;;  %s657_s6 = smov (!%p138_p2), 32  }
   0x8   : > { %s658_s7 = smov (!%p138_p2), 64   ;;  %s659_s8 = smov (!%p138_p2), 48  }
   0x9   : > { %s660_s9 = smov (!%p138_p2), 16  }
   0xb   : > { %v653_v0 = vmov 0   ;;  %v174_v1 = vld [vmem:[%s871_s2] sm:$0xff]  ;;  %s874_s13 = smov (!%p161_p3, %s536_s13), 1  ;;  %v175_v3 = vld [vmem:[%s871_s2 + $0x8] sm:$0xff]  ;;  %vm197_vm0 = vcmask 1043456   ;;  %vm190_vm1 = vcmask 31744  }
   0xc   : > { %644 = vset.pattern.permute.xlu0 %v653_v0  ;;  %s623_s16 = sshll.u32 %s874_s13, 3  ;;  %v171_v4 = vld [vmem:[%s870_s1] sm:$0xff]  ;;  %v172_v5 = vld [vmem:[%s870_s1 + $0x8] sm:$0xff]  ;;  %s626_s26 = smul.u32 288, %s874_s13  ;;  %vm248_vm2 = vcmask 125952   ;;  %vm251_vm3 = vcmask 130052  }
   0xd   : > { %178 = vperm.xlu0 %644, %v174_v1   ;;  %s165_s19 = scalar_lea.vmem %s869_s0, %s623_s16  ;;  %v661_v39 = vmov 0.0  }
   0xe   : > { %v173_v2 = vld [vmem:[%s165_s19] sm:$0xff]  ;;  %s708_s29 = scalar_lea.vmem %s872_s3, %s626_s26 }
   0xf   : > { %187 = vst [vmem:[#allocation1] ss:$2 sm:$0xff] %v173_v2 }
  0x10   : > { %613 = vst.msk [vmem:[%s708_s29 + $0x100] sm:$0xf] %vm248_vm2, %v661_v39 }
  0x11   : > { %614 = vst.msk [vmem:[%s708_s29 + $0x104] sm:$0xf] %vm248_vm2, %v661_v39 }
  0x12   : > { %615 = vst.msk [vmem:[%s708_s29 + $0x108] sm:$0xf] %vm248_vm2, %v661_v39 }
  0x13   : > { %616 = vst.msk [vmem:[%s708_s29 + $0x10c] sm:$0xf] %vm248_vm2, %v661_v39 }
  0x14   : > { %617 = vst.msk [vmem:[%s708_s29 + $0x110] sm:$0xf] %vm248_vm2, %v661_v39 }
  0x15   : > { %183 = vperm.xlu0 %644, %v175_v3   ;;  %618 = vst.msk [vmem:[%s708_s29 + $0x114] sm:$0xf] %vm248_vm2, %v661_v39 }
  0x16   : > { %v188_v6 = vld.sshfl [vmem:[#allocation1] sm:$0xff pattern:$0x75316420]  ;;  %v189_v7 = vld.sshfl [vmem:[#allocation1 + $0x8] sm:$0xff pattern:$0x75316420] }
  0x17   : > { %544 = vmatpush.msk.msra.mxu0 %vm197_vm0, %v188_v6  ;;  %624 = vmatpush.msk.msra.mxu2 %vm197_vm0, %v188_v6  ;;  %619 = vst.msk [vmem:[%s708_s29 + $0x118] sm:$0xf] %vm248_vm2, %v661_v39 }
  0x18   : > { %547 = vmatpush.msk.msra.mxu1 %vm197_vm0, %v189_v7  ;;  %625 = vmatpush.msk.msra.mxu3 %vm197_vm0, %v189_v7  ;;  %620 = vst.msk [vmem:[%s708_s29 + $0x11c] sm:$0xf] %vm248_vm2, %v661_v39 }
  0x19   : > { %545 = vmatmul.msk.f32.vlgmr.msra.gmra.mxu0 %vm190_vm1, %v171_v4  ;;  %546 = vmatmul.msk.f32.vlgmr.msra.gmra.mxu2 %vm190_vm1, %v172_v5 }
  0x1a   : > { %548 = vmatmul.msk.f32.vlgmr.msra.gmra.mxu1 %vm190_vm1, %v171_v4  ;;  %549 = vmatmul.msk.f32.vlgmr.msra.gmra.mxu3 %vm190_vm1, %v172_v5 }
  0x7f   : > { %v179_v8 = vpop.permute.xlu0 %178 }
  0x87   : > { %v184_v13 = vpop.permute.xlu0 %183 }
  0x96   : > { %v219_v9 = vpop.f32.mrf.mxu0 }
  0x97   : > { %v220_v10 = vadd.f32 %v219_v9, %v179_v8  ;;  %v242_v11 = vpop.f32.mrf.mxu1 }
  0x98   : > { %v243_v12 = vadd.f32 %v242_v11, %v179_v8 }
  0x99   : > { %249 = vst.msk [vmem:[%s708_s29] sm:$0xf] %vm248_vm2, %v220_v10  ;;  %287 = vrot.lane.b32.xlu0 %v220_v10, %s654_s30  ;;  %273 = vrot.lane.b32.xlu2 %v220_v10, %s655_s4 }
  0x9a   : > { %550 = vst.msk [vmem:[%s708_s29] sm:$0xf0] %vm251_vm3, %v220_v10  ;;  %258 = vrot.lane.b32.xlu1 %v220_v10, %s656_s5 }
  0x9b   : > { %581 = vst.msk [vmem:[%s708_s29 + $0x80] sm:$0xf] %vm248_vm2, %v243_v12 }
  0x9c   : > { %582 = vst.msk [vmem:[%s708_s29 + $0x80] sm:$0xf0] %vm251_vm3, %v243_v12  ;;  %v222_v14 = vpop.f32.mrf.mxu2 }
  0x9d   : > { %v223_v15 = vadd.f32 %v222_v14, %v184_v13  ;;  %v245_v16 = vpop.f32.mrf.mxu3 }
  0x9e   : > { %v246_v17 = vadd.f32 %v245_v16, %v184_v13 }
  0x9f   : > { %551 = vst.msk [vmem:[%s708_s29 + $0x8] sm:$0xf] %vm248_vm2, %v223_v15 }
  0xa0   : > { %552 = vst.msk [vmem:[%s708_s29 + $0x8] sm:$0xf0] %vm251_vm3, %v223_v15 }
  0xa1   : > { %583 = vst.msk [vmem:[%s708_s29 + $0x88] sm:$0xf] %vm248_vm2, %v246_v17  ;;  %329 = vrot.lane.b32.xlu0 %v220_v10, %s657_s6  ;;  %301 = vrot.lane.b32.xlu2 %v220_v10, %s658_s7 }
  0xa2   : > { %584 = vst.msk [vmem:[%s708_s29 + $0x88] sm:$0xf0] %vm251_vm3, %v246_v17  ;;  %315 = vrot.lane.b32.xlu1 %v220_v10, %s659_s8 }
  0xa9   : > { %381 = vrot.lane.b32.xlu0 %v243_v12, %s655_s4  ;;  %343 = vrot.lane.b32.xlu2 %v220_v10, %s660_s9 }
  0xaa   : > { %366 = vrot.lane.b32.xlu1 %v243_v12, %s656_s5 }
  0xb1   : > { %423 = vrot.lane.b32.xlu0 %v243_v12, %s659_s8  ;;  %395 = vrot.lane.b32.xlu2 %v243_v12, %s654_s30 }
  0xb2   : > { %409 = vrot.lane.b32.xlu1 %v243_v12, %s658_s7 }
  0xb9   : > { %308 = vrot.lane.b32.xlu0 %v223_v15, %s658_s7  ;;  %437 = vrot.lane.b32.xlu2 %v243_v12, %s657_s6 }
  0xba   : > { %266 = vrot.lane.b32.xlu1 %v223_v15, %s656_s5 }
  0xc1   : > { %350 = vrot.lane.b32.xlu0 %v223_v15, %s660_s9  ;;  %280 = vrot.lane.b32.xlu2 %v223_v15, %s655_s4 }
  0xc2   : > { %294 = vrot.lane.b32.xlu1 %v223_v15, %s654_s30 }
  0xc9   : > { %402 = vrot.lane.b32.xlu0 %v246_v17, %s654_s30  ;;  %322 = vrot.lane.b32.xlu2 %v223_v15, %s659_s8 }
  0xca   : > { %336 = vrot.lane.b32.xlu1 %v223_v15, %s657_s6 }
  0xd1   : > { %444 = vrot.lane.b32.xlu0 %v246_v17, %s657_s6  ;;  %374 = vrot.lane.b32.xlu2 %v246_v17, %s656_s5 }
  0xd2   : > { %388 = vrot.lane.b32.xlu1 %v246_v17, %s655_s4 }
  0xd9   : > { %416 = vrot.lane.b32.xlu2 %v246_v17, %s658_s7 }
  0xda   : > { %430 = vrot.lane.b32.xlu1 %v246_v17, %s659_s8 }
  0xe1   : > { %458 = vrot.lane.b32.xlu2 %v246_v17, %s660_s9 }
  0xe2   : > { %451 = vrot.lane.b32.xlu1 %v243_v12, %s660_s9 }
  0xf3   : > { %v274_v18 = vpop.permute.xlu2 %273 }
  0xf4   : > { %557 = vst.msk [vmem:[%s708_s29 + $0x20] sm:$0xf] %vm248_vm2, %v274_v18 }
  0xf5   : > { %558 = vst.msk [vmem:[%s708_s29 + $0x20] sm:$0xf0] %vm251_vm3, %v274_v18 }
  0xfb   : > { %v302_v19 = vpop.permute.xlu2 %301 }
  0xfc   : > { %565 = vst.msk [vmem:[%s708_s29 + $0x40] sm:$0xf] %vm248_vm2, %v302_v19 }
  0xfd   : > { %566 = vst.msk [vmem:[%s708_s29 + $0x40] sm:$0xf0] %vm251_vm3, %v302_v19 }
 0x103   : > { %v344_v20 = vpop.permute.xlu2 %343 }
 0x104   : > { %577 = vst.msk [vmem:[%s708_s29 + $0x70] sm:$0xf] %vm248_vm2, %v344_v20 }
 0x105   : > { %578 = vst.msk [vmem:[%s708_s29 + $0x70] sm:$0xf0] %vm251_vm3, %v344_v20 }
 0x10b   : > { %v288_v21 = vpop.permute.xlu0 %287  ;;  %v396_v22 = vpop.permute.xlu2 %395 }
 0x10c   : > { %561 = vst.msk [vmem:[%s708_s29 + $0x30] sm:$0xf] %vm248_vm2, %v288_v21  ;;  %v259_v23 = vpop.permute.xlu1 %258 }
 0x10d   : > { %562 = vst.msk [vmem:[%s708_s29 + $0x30] sm:$0xf0] %vm251_vm3, %v288_v21 }
 0x10e   : > { %593 = vst.msk [vmem:[%s708_s29 + $0xb0] sm:$0xf] %vm248_vm2, %v396_v22 }
 0x10f   : > { %594 = vst.msk [vmem:[%s708_s29 + $0xb0] sm:$0xf0] %vm251_vm3, %v396_v22 }
 0x110   : > { %553 = vst.msk [vmem:[%s708_s29 + $0x10] sm:$0xf] %vm248_vm2, %v259_v23 }
 0x111   : > { %554 = vst.msk [vmem:[%s708_s29 + $0x10] sm:$0xf0] %vm251_vm3, %v259_v23 }
 0x113   : > { %v330_v24 = vpop.permute.xlu0 %329  ;;  %v438_v25 = vpop.permute.xlu2 %437 }
 0x114   : > { %573 = vst.msk [vmem:[%s708_s29 + $0x60] sm:$0xf] %vm248_vm2, %v330_v24  ;;  %v316_v26 = vpop.permute.xlu1 %315 }
 0x115   : > { %574 = vst.msk [vmem:[%s708_s29 + $0x60] sm:$0xf0] %vm251_vm3, %v330_v24 }
 0x116   : > { %605 = vst.msk [vmem:[%s708_s29 + $0xe0] sm:$0xf] %vm248_vm2, %v438_v25 }
 0x117   : > { %606 = vst.msk [vmem:[%s708_s29 + $0xe0] sm:$0xf0] %vm251_vm3, %v438_v25 }
 0x118   : > { %569 = vst.msk [vmem:[%s708_s29 + $0x50] sm:$0xf] %vm248_vm2, %v316_v26 }
 0x119   : > { %570 = vst.msk [vmem:[%s708_s29 + $0x50] sm:$0xf0] %vm251_vm3, %v316_v26 }
 0x11b   : > { %v382_v27 = vpop.permute.xlu0 %381  ;;  %v281_v28 = vpop.permute.xlu2 %280 }
 0x11c   : > { %589 = vst.msk [vmem:[%s708_s29 + $0xa0] sm:$0xf] %vm248_vm2, %v382_v27  ;;  %v367_v29 = vpop.permute.xlu1 %366 }
 0x11d   : > { %590 = vst.msk [vmem:[%s708_s29 + $0xa0] sm:$0xf0] %vm251_vm3, %v382_v27 }
 0x11e   : > { %559 = vst.msk [vmem:[%s708_s29 + $0x28] sm:$0xf] %vm248_vm2, %v281_v28 }
 0x11f   : > { %560 = vst.msk [vmem:[%s708_s29 + $0x28] sm:$0xf0] %vm251_vm3, %v281_v28 }
 0x120   : > { %585 = vst.msk [vmem:[%s708_s29 + $0x90] sm:$0xf] %vm248_vm2, %v367_v29 }
 0x121   : > { %586 = vst.msk [vmem:[%s708_s29 + $0x90] sm:$0xf0] %vm251_vm3, %v367_v29 }
 0x123   : > { %v424_v30 = vpop.permute.xlu0 %423  ;;  %v323_v31 = vpop.permute.xlu2 %322 }
 0x124   : > { %601 = vst.msk [vmem:[%s708_s29 + $0xd0] sm:$0xf] %vm248_vm2, %v424_v30  ;;  %v410_v32 = vpop.permute.xlu1 %409 }
 0x125   : > { %602 = vst.msk [vmem:[%s708_s29 + $0xd0] sm:$0xf0] %vm251_vm3, %v424_v30 }
 0x126   : > { %571 = vst.msk [vmem:[%s708_s29 + $0x58] sm:$0xf] %vm248_vm2, %v323_v31 }
 0x127   : > { %572 = vst.msk [vmem:[%s708_s29 + $0x58] sm:$0xf0] %vm251_vm3, %v323_v31 }
 0x128   : > { %597 = vst.msk [vmem:[%s708_s29 + $0xc0] sm:$0xf] %vm248_vm2, %v410_v32 }
 0x129   : > { %598 = vst.msk [vmem:[%s708_s29 + $0xc0] sm:$0xf0] %vm251_vm3, %v410_v32 }
 0x12b   : > { %v309_v33 = vpop.permute.xlu0 %308  ;;  %v375_v34 = vpop.permute.xlu2 %374 }
 0x12c   : > { %567 = vst.msk [vmem:[%s708_s29 + $0x48] sm:$0xf] %vm248_vm2, %v309_v33  ;;  %v267_v35 = vpop.permute.xlu1 %266 }
 0x12d   : > { %568 = vst.msk [vmem:[%s708_s29 + $0x48] sm:$0xf0] %vm251_vm3, %v309_v33 }
 0x12e   : > { %587 = vst.msk [vmem:[%s708_s29 + $0x98] sm:$0xf] %vm248_vm2, %v375_v34 }
 0x12f   : > { %588 = vst.msk [vmem:[%s708_s29 + $0x98] sm:$0xf0] %vm251_vm3, %v375_v34 }
 0x130   : > { %555 = vst.msk [vmem:[%s708_s29 + $0x18] sm:$0xf] %vm248_vm2, %v267_v35 }
 0x131   : > { %556 = vst.msk [vmem:[%s708_s29 + $0x18] sm:$0xf0] %vm251_vm3, %v267_v35 }
 0x133   : > { %v351_v36 = vpop.permute.xlu0 %350  ;;  %v417_v37 = vpop.permute.xlu2 %416 }
 0x134   : > { %579 = vst.msk [vmem:[%s708_s29 + $0x78] sm:$0xf] %vm248_vm2, %v351_v36  ;;  %v295_v38 = vpop.permute.xlu1 %294 }
 0x135   : > { %580 = vst.msk [vmem:[%s708_s29 + $0x78] sm:$0xf0] %vm251_vm3, %v351_v36 }
 0x136   : > { %599 = vst.msk [vmem:[%s708_s29 + $0xc8] sm:$0xf] %vm248_vm2, %v417_v37 }
 0x137   : > { %600 = vst.msk [vmem:[%s708_s29 + $0xc8] sm:$0xf0] %vm251_vm3, %v417_v37 }
 0x138   : > { %563 = vst.msk [vmem:[%s708_s29 + $0x38] sm:$0xf] %vm248_vm2, %v295_v38 }
 0x139   : > { %564 = vst.msk [vmem:[%s708_s29 + $0x38] sm:$0xf0] %vm251_vm3, %v295_v38 }
 0x13b   : > { %v403_v40 = vpop.permute.xlu0 %402  ;;  %v459_v41 = vpop.permute.xlu2 %458 }
 0x13c   : > { %595 = vst.msk [vmem:[%s708_s29 + $0xb8] sm:$0xf] %vm248_vm2, %v403_v40  ;;  %v337_v42 = vpop.permute.xlu1 %336 }
 0x13d   : > { %596 = vst.msk [vmem:[%s708_s29 + $0xb8] sm:$0xf0] %vm251_vm3, %v403_v40 }
 0x13e   : > { %611 = vst.msk [vmem:[%s708_s29 + $0xf8] sm:$0xf] %vm248_vm2, %v459_v41 }
 0x13f   : > { %612 = vst.msk [vmem:[%s708_s29 + $0xf8] sm:$0xf0] %vm251_vm3, %v459_v41 }
 0x140   : > { %575 = vst.msk [vmem:[%s708_s29 + $0x68] sm:$0xf] %vm248_vm2, %v337_v42 }
 0x141   : > { %576 = vst.msk [vmem:[%s708_s29 + $0x68] sm:$0xf0] %vm251_vm3, %v337_v42 }
 0x143   : > { %v445_v43 = vpop.permute.xlu0 %444 }
 0x144   : > { %607 = vst.msk [vmem:[%s708_s29 + $0xe8] sm:$0xf] %vm248_vm2, %v445_v43  ;;  %v389_v44 = vpop.permute.xlu1 %388 }
 0x145   : > { %608 = vst.msk [vmem:[%s708_s29 + $0xe8] sm:$0xf0] %vm251_vm3, %v445_v43 }
 0x146   : > { %591 = vst.msk [vmem:[%s708_s29 + $0xa8] sm:$0xf] %vm248_vm2, %v389_v44 }
 0x147   : > { %592 = vst.msk [vmem:[%s708_s29 + $0xa8] sm:$0xf0] %vm251_vm3, %v389_v44 }
 0x14c   : > { %v431_v45 = vpop.permute.xlu1 %430 }
 0x14d   : > { %603 = vst.msk [vmem:[%s708_s29 + $0xd8] sm:$0xf] %vm248_vm2, %v431_v45 }
 0x14e   : > { %604 = vst.msk [vmem:[%s708_s29 + $0xd8] sm:$0xf0] %vm251_vm3, %v431_v45 }
 0x154   : > { %v452_v46 = vpop.permute.xlu1 %451 }
 0x155   : > { %609 = vst.msk [vmem:[%s708_s29 + $0xf0] sm:$0xf] %vm248_vm2, %v452_v46 }
 0x156   : > { %610 = vst.msk [vmem:[%s708_s29 + $0xf0] sm:$0xf0] %vm251_vm3, %v452_v46 }
 0x157 PF: > { %s13_s12 = sadd.s32 1, %s651_s12  }
 0x158   : > { %p10_p4 = scmp.ge.s32.totalorder %s13_s12, 4  }
 0x15a   :  { %12 = sbr.rel (!%p10_p4) target bundleno = 1 (0x1), region = 133 }

</bundles_post_ra>
